<compile_context>
chip_gen: v5e
topology: v5e:2x2
jax: 0.10.0
libtpu: 0.0.40
codegen_flags: <defaults>
</compile_context>

<pallas_src>
import functools

import jax
import jax.numpy as jnp
import numpy as np
from jax.experimental import pallas as pl
from jax.experimental.pallas import tpu as pltpu


def _whl_kernel(x_ref, w1_ref, b1_ref, w2_ref, b2_ref, w3_ref, b3_ref, *rest,
                window_size, n_w, C2, C4, triangle_mode):
    if triangle_mode:
        triw_ref, out_ref = rest
    else:
        (out_ref,) = rest

    bt = x_ref.shape[0]
    L = x_ref.shape[2]

    # (Bt, C, L) slab: L on lanes, C on sublanes.  Upcast once after load so a
    # bf16 input path stays legal on v5e (no bf16 VPU/EUP there).
    # TODO(synk): on v6e/v7x the max tree could stay in bf16 to halve vreg
    # footprint; kept f32 for generation-agnostic correctness.
    x = x_ref[...].astype(jnp.float32)

    # ---- MaxPool1d(kernel=window_size, stride=1): dilated-max log tree ----
    # Full-width pltpu.roll (XLU lane rotation, positive shift == -span mod L)
    # keeps vreg layouts stable; after a step with cumulative span S,
    # m[..., i] == max(x[..., i:i+S]) for i <= L - S, which covers all
    # i < n_w.  Columns >= n_w hold wrapped-around garbage (finite) and are
    # masked / zero-weighted at the end.
    m = x
    span = 1
    while span * 2 <= window_size:
        m = jnp.maximum(m, pltpu.roll(m, L - span, 2))
        span *= 2
    if span < window_size:                       # non-power-of-2 windows
        s = window_size - span
        m = jnp.maximum(m, pltpu.roll(m, L - s, 2))
    # m: (Bt, C, L), valid in columns [0, n_w)

    # ---- 1x1 Conv #1 (C -> C/2) + SiLU: full-slab multiply + sublane reduce -
    # w1_ref[o] is (C, 1); every operand keeps full sublane/lane density.
    h1 = []
    for o in range(C2):
        acc = jnp.sum(m * w1_ref[o], axis=1) + b1_ref[o]       # (Bt, L)
        h1.append(acc * jax.nn.sigmoid(acc))                   # SiLU -> EUP

    # ---- 1x1 Conv #2 (C/2 -> C/4) + SiLU: scalar * dense (Bt, L) slab FMAs --
    h2 = []
    for o in range(C4):
        acc = h1[0] * w2_ref[o, 0]
        for c in range(1, C2):
            acc = acc + h1[c] * w2_ref[o, c]
        acc = acc + b2_ref[o]
        h2.append(acc * jax.nn.sigmoid(acc))

    # ---- 1x1 Conv #3 (C/4 -> 1): weighted channel sum ----
    logits = h2[0] * w3_ref[0]
    for c in range(1, C4):
        logits = logits + h2[c] * w3_ref[c]
    logits = logits + b3_ref[0]                                 # (Bt, L)

    if triangle_mode:
        # (1, L) weights: pre-normalized by their sum, zero beyond n_w.
        res = jnp.sum(logits * triw_ref[...], axis=-1, keepdims=True)
    else:
        # adaptive_max_pool1d(output_size=1) == global max over valid columns.
        col = jax.lax.broadcasted_iota(jnp.int32, logits.shape, 1)
        neg = jnp.finfo(jnp.float32).min
        res = jnp.max(jnp.where(col < n_w, logits, neg), axis=-1, keepdims=True)

    out_ref[...] = res.reshape(bt, 1, 1)


def _triangle_weights(n_w):
    hlf = n_w // 2 + (n_w % 2)
    w = jnp.ones((n_w,), jnp.float32)
    w = w.at[:hlf].set(jnp.linspace(0.0, 1.0, hlf))
    w = w.at[-hlf:].set(jnp.linspace(1.0, 0.0, hlf))
    return w


def _pick_batch_tile(B, C, L, itemsize, block_budget_bytes=2 << 20):
    """Budget-driven batch tile.

    Each grid step's input block is ~<= 2 MiB (double-buffered by the Pallas
    pipeline), large enough to approach the HBM roofline while fitting well
    inside scoped VMEM on v5e/v6e/v7x together with the f32 working slabs.
    Keep >= 2 grid blocks whenever B >= 2: on v7x the "parallel" grid axis is
    sharded across its two TensorCores, elsewhere it simply enables
    DMA/compute overlap at negligible extra per-step overhead."""
    row_bytes = max(1, C * L * itemsize)
    bt = int(max(1, min(B, block_budget_bytes // row_bytes)))
    if B >= 2 and bt >= B:
        bt = (B + 1) // 2
    return bt


def windowed_head_layer(x_ncl, params, *, window_size=16, window_stride=1,
                        triangle_mode=False):
    """x_ncl: (B, C, L) — same NCL layout as the PyTorch module.

    params = (w1, b1, w2, b2, w3, b3) with PyTorch Conv1d (out_ch, in_ch)
    convention: w1 (C/2, C), b1 (C/2,), w2 (C/4, C/2), b2 (C/4,),
    w3 (C/4,) [out_size=1], b3 (1,).
    """
    # TODO(synk): window_stride > 1 needs a strided lane subsample after the
    # max tree; the module default (window_stride=1) is implemented.
    assert window_stride == 1, "only window_stride=1 is implemented"

    w1, b1, w2, b2, w3, b3 = params
    B, C, L = x_ncl.shape
    C2, C4 = w1.shape[0], w2.shape[0]
    assert w1.shape == (C2, C) and w2.shape == (C4, C2) and w3.shape == (C4,)
    assert 1 <= window_size <= L
    n_w = L - window_size + 1

    itemsize = int(jnp.dtype(x_ncl.dtype).itemsize)
    Bt = _pick_batch_tile(B, C, L, itemsize)
    n_blocks = pl.cdiv(B, Bt)
    Bpad = n_blocks * Bt
    x_in = x_ncl
    if Bpad != B:
        # TODO(synk): a masked last block would avoid this extra HBM pass for
        # batch sizes that Bt does not divide.
        x_in = jnp.pad(x_ncl, ((0, Bpad - B), (0, 0), (0, 0)))

    f32 = jnp.float32
    w1v = jnp.asarray(w1, f32).reshape(C2, C, 1)   # VMEM, broadcast-ready

    smem = pl.BlockSpec(memory_space=pltpu.MemorySpace.SMEM)
    in_specs = [
        pl.BlockSpec((Bt, C, L), lambda b: (b, 0, 0)),   # x: channels-first slab
        pl.BlockSpec((C2, C, 1), lambda b: (0, 0, 0)),   # w1 (VMEM)
        smem, smem, smem, smem, smem,                    # b1 w2 b2 w3 b3
    ]
    args = [x_in, w1v,
            jnp.asarray(b1, f32), jnp.asarray(w2, f32), jnp.asarray(b2, f32),
            jnp.asarray(w3, f32), jnp.asarray(b3, f32)]

    if triangle_mode:
        tw = _triangle_weights(n_w)
        tw = tw / jnp.sum(tw)                            # pre-normalized
        triw = jnp.zeros((1, L), f32).at[0, :n_w].set(tw)  # zero beyond n_w
        in_specs.append(pl.BlockSpec((1, L), lambda b: (0, 0)))
        args.append(triw)

    kernel = functools.partial(_whl_kernel, window_size=window_size, n_w=n_w,
                               C2=C2, C4=C4, triangle_mode=triangle_mode)

    out = pl.pallas_call(
        kernel,
        out_shape=jax.ShapeDtypeStruct((Bpad, 1, 1), jnp.float32),
        grid=(n_blocks,),
        in_specs=in_specs,
        out_specs=pl.BlockSpec((Bt, 1, 1), lambda b: (b, 0, 0)),
        compiler_params=pltpu.CompilerParams(
            dimension_semantics=("parallel",),
            vmem_limit_bytes=32 * 1024 * 1024),
        cost_estimate=pl.CostEstimate(
            flops=2 * B * n_w * (C * C2 + C2 * C4 + C4),
            transcendentals=B * n_w * (C2 + C4),
            bytes_accessed=B * C * L * itemsize + B * 4),
    )(*args)

    out = out[:B]
    if triangle_mode:
        return out.reshape(B)      # matches torch: out.matmul(weights) -> (B,)
    return out.reshape(B, 1)       # matches adaptive_max_pool1d -> (B, 1)


def _reference(x_ncl, params, window_size, triangle_mode):
    """Pure-JAX reference of the PyTorch forward (both modes)."""
    w1, b1, w2, b2, w3, b3 = params
    B, C, L = x_ncl.shape
    n_w = L - window_size + 1
    windows = jnp.stack([x_ncl[:, :, k:k + n_w] for k in range(window_size)],
                        axis=-1)
    pooled = jnp.max(windows, axis=-1)                    # (B, C, n_w)
    hp = jax.lax.Precision.HIGHEST
    h = jax.nn.silu(jnp.einsum('oc,bcw->bow', w1, pooled, precision=hp)
                    + b1[None, :, None])
    h = jax.nn.silu(jnp.einsum('oc,bcw->bow', w2, h, precision=hp)
                    + b2[None, :, None])
    logit = jnp.einsum('c,bcw->bw', w3, h, precision=hp) + b3[0]  # (B, n_w)
    if triangle_mode:
        tw = _triangle_weights(n_w)
        return logit @ (tw / jnp.sum(tw))                 # (B,)
    return jnp.max(logit, axis=-1, keepdims=True)         # (B, 1)


if __name__ == "__main__":
    C = 8                       # final_ch
    C2, C4 = C // 2, C // 4
    window_size = 16

    key = jax.random.PRNGKey(0)
    k1, k2, k3, k4, k5, k6, kx = jax.random.split(key, 7)

    # Conv1d(kernel_size=1) weights in PyTorch (out_ch, in_ch) convention.
    params = (
        jax.random.normal(k1, (C2, C), jnp.float32) * 0.2,    # w1
        jax.random.normal(k2, (C2,), jnp.float32) * 0.1,      # b1
        jax.random.normal(k3, (C4, C2), jnp.float32) * 0.2,   # w2
        jax.random.normal(k4, (C4,), jnp.float32) * 0.1,      # b2
        jax.random.normal(k5, (C4,), jnp.float32) * 0.2,      # w3 (out_size=1)
        jax.random.normal(k6, (1,), jnp.float32) * 0.1,       # b3
    )

    # (B, L, triangle_mode); the B=5 case exercises the non-divisor batch path.
    for B, L, tri in ((8, 128, False), (8, 128, True), (5, 128, False)):
        x = jax.random.normal(jax.random.fold_in(kx, 2 * B + int(tri)),
                              (B, C, L), jnp.float32)
        pred = windowed_head_layer(x, params, window_size=window_size,
                                   window_stride=1, triangle_mode=tri)
        pred = jax.block_until_ready(pred)
        ref = _reference(x, params, window_size, tri)
        np.testing.assert_allclose(np.asarray(pred), np.asarray(ref),
                                   rtol=1e-5, atol=1e-5)

    print("KERNEL_OK")
</pallas_src>

<mosaic_0001>
module attributes {stable_mosaic.version = 11 : i64} {
  func.func @_whl_kernel(%arg0: i32, %arg1: memref<4x8x128xf32, #tpu.memory_space<vmem>>, %arg2: memref<4x8x1xf32, #tpu.memory_space<vmem>>, %arg3: memref<4xf32, #tpu.memory_space<smem>>, %arg4: memref<2x4xf32, #tpu.memory_space<smem>>, %arg5: memref<2xf32, #tpu.memory_space<smem>>, %arg6: memref<2xf32, #tpu.memory_space<smem>>, %arg7: memref<1xf32, #tpu.memory_space<smem>>, %arg8: memref<4x1x1xf32, #tpu.memory_space<vmem>>) attributes {dimension_semantics = [#tpu.dimension_semantics<parallel>], iteration_bounds = array<i64: 2>, scalar_prefetch = 0 : i64, scratch_operands = 0 : i64, tpu.core_type = #tpu.core_type<tc>, window_params = [{transform_indices = @transform_0, window_bounds = array<i64: 4, 8, 128>}, {pipeline_mode = #tpu.pipeline_mode<synchronous>, transform_indices = @transform_1, window_bounds = array<i64: 4, 8, 1>}, {transform_indices = @transform_2, window_bounds = array<i64: 4>}, {transform_indices = @transform_3, window_bounds = array<i64: 2, 4>}, {transform_indices = @transform_4, window_bounds = array<i64: 2>}, {transform_indices = @transform_5, window_bounds = array<i64: 2>}, {transform_indices = @transform_6, window_bounds = array<i64: 1>}, {transform_indices = @transform_7, window_bounds = array<i64: 4, 1, 1>}]} {
    %c0 = arith.constant 0 : index
    %c0_0 = arith.constant 0 : index
    %c0_1 = arith.constant 0 : index
    %0 = vector.load %arg1[%c0, %c0_0, %c0_1] : memref<4x8x128xf32, #tpu.memory_space<vmem>>, vector<4x8x128xf32>
    %c127_i32 = arith.constant 127 : i32
    %1 = tpu.dynamic_rotate %0 by %c127_i32 dim 2 : vector<4x8x128xf32>, i32 -> vector<4x8x128xf32>
    %2 = arith.maximumf %0, %1 : vector<4x8x128xf32>
    %c126_i32 = arith.constant 126 : i32
    %3 = tpu.dynamic_rotate %2 by %c126_i32 dim 2 : vector<4x8x128xf32>, i32 -> vector<4x8x128xf32>
    %4 = arith.maximumf %2, %3 : vector<4x8x128xf32>
    %c124_i32 = arith.constant 124 : i32
    %5 = tpu.dynamic_rotate %4 by %c124_i32 dim 2 : vector<4x8x128xf32>, i32 -> vector<4x8x128xf32>
    %6 = arith.maximumf %4, %5 : vector<4x8x128xf32>
    %c120_i32 = arith.constant 120 : i32
    %7 = tpu.dynamic_rotate %6 by %c120_i32 dim 2 : vector<4x8x128xf32>, i32 -> vector<4x8x128xf32>
    %8 = arith.maximumf %6, %7 : vector<4x8x128xf32>
    %c0_2 = arith.constant 0 : index
    %c0_3 = arith.constant 0 : index
    %c0_4 = arith.constant 0 : index
    %9 = vector.load %arg2[%c0_2, %c0_3, %c0_4] : memref<4x8x1xf32, #tpu.memory_space<vmem>>, vector<1x8x1xf32>
    %10 = vector.shape_cast %9 : vector<1x8x1xf32> to vector<8x1xf32>
    %11 = vector.shape_cast %10 : vector<8x1xf32> to vector<1x8x1xf32>
    %12 = vector.broadcast %11 : vector<1x8x1xf32> to vector<4x8x128xf32>
    %13 = arith.mulf %8, %12 : vector<4x8x128xf32>
    %cst = arith.constant dense<0.000000e+00> : vector<4x128xf32>
    %14 = vector.multi_reduction <add>, %13, %cst [1] : vector<4x8x128xf32> to vector<4x128xf32>
    %c0_5 = arith.constant 0 : index
    %15 = memref.load %arg3[%c0_5] : memref<4xf32, #tpu.memory_space<smem>>
    %16 = vector.broadcast %15 : f32 to vector<4x128xf32>
    %17 = arith.addf %14, %16 : vector<4x128xf32>
    %18 = arith.negf %17 : vector<4x128xf32>
    %19 = math.exp %18 : vector<4x128xf32>
    %cst_6 = arith.constant 1.000000e+00 : f32
    %20 = vector.broadcast %cst_6 : f32 to vector<4x128xf32>
    %21 = arith.addf %20, %19 : vector<4x128xf32>
    %22 = arith.divf %20, %21 : vector<4x128xf32>
    %23 = arith.mulf %17, %22 : vector<4x128xf32>
    %c1 = arith.constant 1 : index
    %c0_7 = arith.constant 0 : index
    %c0_8 = arith.constant 0 : index
    %24 = vector.load %arg2[%c1, %c0_7, %c0_8] : memref<4x8x1xf32, #tpu.memory_space<vmem>>, vector<1x8x1xf32>
    %25 = vector.shape_cast %24 : vector<1x8x1xf32> to vector<8x1xf32>
    %26 = vector.shape_cast %25 : vector<8x1xf32> to vector<1x8x1xf32>
    %27 = vector.broadcast %26 : vector<1x8x1xf32> to vector<4x8x128xf32>
    %28 = arith.mulf %8, %27 : vector<4x8x128xf32>
    %cst_9 = arith.constant dense<0.000000e+00> : vector<4x128xf32>
    %29 = vector.multi_reduction <add>, %28, %cst_9 [1] : vector<4x8x128xf32> to vector<4x128xf32>
    %c1_10 = arith.constant 1 : index
    %30 = memref.load %arg3[%c1_10] : memref<4xf32, #tpu.memory_space<smem>>
    %31 = vector.broadcast %30 : f32 to vector<4x128xf32>
    %32 = arith.addf %29, %31 : vector<4x128xf32>
    %33 = arith.negf %32 : vector<4x128xf32>
    %34 = math.exp %33 : vector<4x128xf32>
    %cst_11 = arith.constant 1.000000e+00 : f32
    %35 = vector.broadcast %cst_11 : f32 to vector<4x128xf32>
    %36 = arith.addf %35, %34 : vector<4x128xf32>
    %37 = arith.divf %35, %36 : vector<4x128xf32>
    %38 = arith.mulf %32, %37 : vector<4x128xf32>
    %c2 = arith.constant 2 : index
    %c0_12 = arith.constant 0 : index
    %c0_13 = arith.constant 0 : index
    %39 = vector.load %arg2[%c2, %c0_12, %c0_13] : memref<4x8x1xf32, #tpu.memory_space<vmem>>, vector<1x8x1xf32>
    %40 = vector.shape_cast %39 : vector<1x8x1xf32> to vector<8x1xf32>
    %41 = vector.shape_cast %40 : vector<8x1xf32> to vector<1x8x1xf32>
    %42 = vector.broadcast %41 : vector<1x8x1xf32> to vector<4x8x128xf32>
    %43 = arith.mulf %8, %42 : vector<4x8x128xf32>
    %cst_14 = arith.constant dense<0.000000e+00> : vector<4x128xf32>
    %44 = vector.multi_reduction <add>, %43, %cst_14 [1] : vector<4x8x128xf32> to vector<4x128xf32>
    %c2_15 = arith.constant 2 : index
    %45 = memref.load %arg3[%c2_15] : memref<4xf32, #tpu.memory_space<smem>>
    %46 = vector.broadcast %45 : f32 to vector<4x128xf32>
    %47 = arith.addf %44, %46 : vector<4x128xf32>
    %48 = arith.negf %47 : vector<4x128xf32>
    %49 = math.exp %48 : vector<4x128xf32>
    %cst_16 = arith.constant 1.000000e+00 : f32
    %50 = vector.broadcast %cst_16 : f32 to vector<4x128xf32>
    %51 = arith.addf %50, %49 : vector<4x128xf32>
    %52 = arith.divf %50, %51 : vector<4x128xf32>
    %53 = arith.mulf %47, %52 : vector<4x128xf32>
    %c3 = arith.constant 3 : index
    %c0_17 = arith.constant 0 : index
    %c0_18 = arith.constant 0 : index
    %54 = vector.load %arg2[%c3, %c0_17, %c0_18] : memref<4x8x1xf32, #tpu.memory_space<vmem>>, vector<1x8x1xf32>
    %55 = vector.shape_cast %54 : vector<1x8x1xf32> to vector<8x1xf32>
    %56 = vector.shape_cast %55 : vector<8x1xf32> to vector<1x8x1xf32>
    %57 = vector.broadcast %56 : vector<1x8x1xf32> to vector<4x8x128xf32>
    %58 = arith.mulf %8, %57 : vector<4x8x128xf32>
    %cst_19 = arith.constant dense<0.000000e+00> : vector<4x128xf32>
    %59 = vector.multi_reduction <add>, %58, %cst_19 [1] : vector<4x8x128xf32> to vector<4x128xf32>
    %c3_20 = arith.constant 3 : index
    %60 = memref.load %arg3[%c3_20] : memref<4xf32, #tpu.memory_space<smem>>
    %61 = vector.broadcast %60 : f32 to vector<4x128xf32>
    %62 = arith.addf %59, %61 : vector<4x128xf32>
    %63 = arith.negf %62 : vector<4x128xf32>
    %64 = math.exp %63 : vector<4x128xf32>
    %cst_21 = arith.constant 1.000000e+00 : f32
    %65 = vector.broadcast %cst_21 : f32 to vector<4x128xf32>
    %66 = arith.addf %65, %64 : vector<4x128xf32>
    %67 = arith.divf %65, %66 : vector<4x128xf32>
    %68 = arith.mulf %62, %67 : vector<4x128xf32>
    %c0_22 = arith.constant 0 : index
    %c0_23 = arith.constant 0 : index
    %69 = memref.load %arg4[%c0_22, %c0_23] : memref<2x4xf32, #tpu.memory_space<smem>>
    %70 = vector.broadcast %69 : f32 to vector<4x128xf32>
    %71 = arith.mulf %23, %70 : vector<4x128xf32>
    %c0_24 = arith.constant 0 : index
    %c1_25 = arith.constant 1 : index
    %72 = memref.load %arg4[%c0_24, %c1_25] : memref<2x4xf32, #tpu.memory_space<smem>>
    %73 = vector.broadcast %72 : f32 to vector<4x128xf32>
    %74 = arith.mulf %38, %73 : vector<4x128xf32>
    %75 = arith.addf %71, %74 : vector<4x128xf32>
    %c0_26 = arith.constant 0 : index
    %c2_27 = arith.constant 2 : index
    %76 = memref.load %arg4[%c0_26, %c2_27] : memref<2x4xf32, #tpu.memory_space<smem>>
    %77 = vector.broadcast %76 : f32 to vector<4x128xf32>
    %78 = arith.mulf %53, %77 : vector<4x128xf32>
    %79 = arith.addf %75, %78 : vector<4x128xf32>
    %c0_28 = arith.constant 0 : index
    %c3_29 = arith.constant 3 : index
    %80 = memref.load %arg4[%c0_28, %c3_29] : memref<2x4xf32, #tpu.memory_space<smem>>
    %81 = vector.broadcast %80 : f32 to vector<4x128xf32>
    %82 = arith.mulf %68, %81 : vector<4x128xf32>
    %83 = arith.addf %79, %82 : vector<4x128xf32>
    %c0_30 = arith.constant 0 : index
    %84 = memref.load %arg5[%c0_30] : memref<2xf32, #tpu.memory_space<smem>>
    %85 = vector.broadcast %84 : f32 to vector<4x128xf32>
    %86 = arith.addf %83, %85 : vector<4x128xf32>
    %87 = arith.negf %86 : vector<4x128xf32>
    %88 = math.exp %87 : vector<4x128xf32>
    %cst_31 = arith.constant 1.000000e+00 : f32
    %89 = vector.broadcast %cst_31 : f32 to vector<4x128xf32>
    %90 = arith.addf %89, %88 : vector<4x128xf32>
    %91 = arith.divf %89, %90 : vector<4x128xf32>
    %92 = arith.mulf %86, %91 : vector<4x128xf32>
    %c1_32 = arith.constant 1 : index
    %c0_33 = arith.constant 0 : index
    %93 = memref.load %arg4[%c1_32, %c0_33] : memref<2x4xf32, #tpu.memory_space<smem>>
    %94 = vector.broadcast %93 : f32 to vector<4x128xf32>
    %95 = arith.mulf %23, %94 : vector<4x128xf32>
    %c1_34 = arith.constant 1 : index
    %c1_35 = arith.constant 1 : index
    %96 = memref.load %arg4[%c1_34, %c1_35] : memref<2x4xf32, #tpu.memory_space<smem>>
    %97 = vector.broadcast %96 : f32 to vector<4x128xf32>
    %98 = arith.mulf %38, %97 : vector<4x128xf32>
    %99 = arith.addf %95, %98 : vector<4x128xf32>
    %c1_36 = arith.constant 1 : index
    %c2_37 = arith.constant 2 : index
    %100 = memref.load %arg4[%c1_36, %c2_37] : memref<2x4xf32, #tpu.memory_space<smem>>
    %101 = vector.broadcast %100 : f32 to vector<4x128xf32>
    %102 = arith.mulf %53, %101 : vector<4x128xf32>
    %103 = arith.addf %99, %102 : vector<4x128xf32>
    %c1_38 = arith.constant 1 : index
    %c3_39 = arith.constant 3 : index
    %104 = memref.load %arg4[%c1_38, %c3_39] : memref<2x4xf32, #tpu.memory_space<smem>>
    %105 = vector.broadcast %104 : f32 to vector<4x128xf32>
    %106 = arith.mulf %68, %105 : vector<4x128xf32>
    %107 = arith.addf %103, %106 : vector<4x128xf32>
    %c1_40 = arith.constant 1 : index
    %108 = memref.load %arg5[%c1_40] : memref<2xf32, #tpu.memory_space<smem>>
    %109 = vector.broadcast %108 : f32 to vector<4x128xf32>
    %110 = arith.addf %107, %109 : vector<4x128xf32>
    %111 = arith.negf %110 : vector<4x128xf32>
    %112 = math.exp %111 : vector<4x128xf32>
    %cst_41 = arith.constant 1.000000e+00 : f32
    %113 = vector.broadcast %cst_41 : f32 to vector<4x128xf32>
    %114 = arith.addf %113, %112 : vector<4x128xf32>
    %115 = arith.divf %113, %114 : vector<4x128xf32>
    %116 = arith.mulf %110, %115 : vector<4x128xf32>
    %c0_42 = arith.constant 0 : index
    %117 = memref.load %arg6[%c0_42] : memref<2xf32, #tpu.memory_space<smem>>
    %118 = vector.broadcast %117 : f32 to vector<4x128xf32>
    %119 = arith.mulf %92, %118 : vector<4x128xf32>
    %c1_43 = arith.constant 1 : index
    %120 = memref.load %arg6[%c1_43] : memref<2xf32, #tpu.memory_space<smem>>
    %121 = vector.broadcast %120 : f32 to vector<4x128xf32>
    %122 = arith.mulf %116, %121 : vector<4x128xf32>
    %123 = arith.addf %119, %122 : vector<4x128xf32>
    %c0_44 = arith.constant 0 : index
    %124 = memref.load %arg7[%c0_44] : memref<1xf32, #tpu.memory_space<smem>>
    %125 = vector.broadcast %124 : f32 to vector<4x128xf32>
    %126 = arith.addf %123, %125 : vector<4x128xf32>
    %127 = tpu.iota {dimensions = array<i32: 1>} : vector<4x128xi32>
    %c113_i32 = arith.constant 113 : i32
    %128 = vector.broadcast %c113_i32 : i32 to vector<4x128xi32>
    %129 = arith.cmpi slt, %127, %128 : vector<4x128xi32>
    %cst_45 = arith.constant -3.40282347E+38 : f32
    %130 = vector.broadcast %cst_45 : f32 to vector<4x128xf32>
    %131 = arith.select %129, %126, %130 : vector<4x128xi1>, vector<4x128xf32>
    %cst_46 = arith.constant dense<0xFF800000> : vector<4xf32>
    %132 = vector.multi_reduction <maximumf>, %131, %cst_46 [1] : vector<4x128xf32> to vector<4xf32>
    %133 = vector.shape_cast %132 : vector<4xf32> to vector<4x1xf32>
    %134 = vector.shape_cast %133 : vector<4x1xf32> to vector<4x1x1xf32>
    %c0_47 = arith.constant 0 : index
    %c0_48 = arith.constant 0 : index
    %c0_49 = arith.constant 0 : index
    %135 = vector.load %arg8[%c0_47, %c0_48, %c0_49] : memref<4x1x1xf32, #tpu.memory_space<vmem>>, vector<4x1x1xf32>
    tpu.vector_store %arg8[%c0_47, %c0_48, %c0_49], %134 {strides = array<i32>} : memref<4x1x1xf32, #tpu.memory_space<vmem>>, vector<4x1x1xf32>,
    return
  }
  func.func @transform_0(%arg0: i32) -> (i32, i32, i32) {
    %c0_i32 = arith.constant 0 : i32
    %c0_i32_0 = arith.constant 0 : i32
    %c0_i32_1 = arith.constant 0 : i32
    return %arg0, %c0_i32, %c0_i32_0 : i32, i32, i32
  }
  func.func @transform_1(%arg0: i32) -> (i32, i32, i32) {
    %c0_i32 = arith.constant 0 : i32
    %c0_i32_0 = arith.constant 0 : i32
    %c0_i32_1 = arith.constant 0 : i32
    %c0_i32_2 = arith.constant 0 : i32
    return %c0_i32, %c0_i32_0, %c0_i32_1 : i32, i32, i32
  }
  func.func @transform_2(%arg0: i32) -> i32 {
    %c0_i32 = arith.constant 0 : i32
    %c0_i32_0 = arith.constant 0 : i32
    return %c0_i32 : i32
  }
  func.func @transform_3(%arg0: i32) -> (i32, i32) {
    %c0_i32 = arith.constant 0 : i32
    %c0_i32_0 = arith.constant 0 : i32
    %c0_i32_1 = arith.constant 0 : i32
    return %c0_i32, %c0_i32_0 : i32, i32
  }
  func.func @transform_4(%arg0: i32) -> i32 {
    %c0_i32 = arith.constant 0 : i32
    %c0_i32_0 = arith.constant 0 : i32
    return %c0_i32 : i32
  }
  func.func @transform_5(%arg0: i32) -> i32 {
    %c0_i32 = arith.constant 0 : i32
    %c0_i32_0 = arith.constant 0 : i32
    return %c0_i32 : i32
  }
  func.func @transform_6(%arg0: i32) -> i32 {
    %c0_i32 = arith.constant 0 : i32
    %c0_i32_0 = arith.constant 0 : i32
    return %c0_i32 : i32
  }
  func.func @transform_7(%arg0: i32) -> (i32, i32, i32) {
    %c0_i32 = arith.constant 0 : i32
    %c0_i32_0 = arith.constant 0 : i32
    %c0_i32_1 = arith.constant 0 : i32
    return %arg0, %c0_i32, %c0_i32_0 : i32, i32, i32
  }
}

</mosaic_0001>

<bundles_post_ra>
// kernel: tpu_custom_call.1
= control target key start
LH: loop header
LB: loop body
LE: loop exit
PB: predicated region body
PF: predicated region fallthrough
CT: control target
= control target key end

     0   :  { %s2735_s0 = inlined_call_operand.hbm [shape: f32[8,8,128], index: 0, kind: input, shape index: {}]   ;;  %s2736_s1 = inlined_call_operand.vmem [shape: f32[4,8,1], index: 1, kind: input, shape index: {}]   ;;  %s2737_s2 = inlined_call_operand.vmem [shape: f32[4], index: 2, kind: input, shape index: {}]   ;;  %s2738_s3 = inlined_call_operand.vmem [shape: f32[2,4], index: 3, kind: input, shape index: {}]   ;;  %s2739_s4 = inlined_call_operand.vmem [shape: f32[2], index: 4, kind: input, shape index: {}]   ;;  %s2740_s5 = inlined_call_operand.vmem [shape: f32[2], index: 5, kind: input, shape index: {}]   ;;  %s2741_s6 = inlined_call_operand.<no memory space> [shape: f32[1], index: 6, kind: input, shape index: {}]   ;;  %s2742_s7 = inlined_call_operand.vmem [shape: f32[8,1,1], index: 7, kind: output, shape index: {}]  }
   0x1   :  { %12 = sst [smem:[#allocation2]] %s2741_s6 }
   0x2   :  { %13 = vsyncpa [#allocation4], 0 }
   0x3   :  { %15 = vsyncpa [#allocation4 + $0x1], 0 }
   0x4   :  { %16 = vsyncpa [#allocation5], 0 }
   0x5   :  { %17 = vsyncpa [#allocation8], 0 }
   0x6   :  { %18 = vsyncpa [#allocation11], 0  ;;  %s1728_s26 = smov 0   ;;  %s1730_s27 = smov 0  }
   0x7   :  { %s1732_s28 = smov 0   ;;  %s1734_s29 = smov 0  }
   0x8 LB: > { %s1290_s6 = sadd.s32 4294967295, %s1672_s29   ;;  %p44_p0 = scmp.ne.s32.totalorder %s1664_s27, %s1660_s26  ;;  %s1672_s29 = sphi %s1734_s29, %s2813_s29   ;;  %s1668_s28 = sphi %s1732_s28, %s2816_s28   ;;  %s1664_s27 = sphi %s1730_s27, %s2815_s27   ;;  %s1660_s26 = sphi %s1728_s26, %s2814_s26  }
   0x9   : > { %p1750_p1 = scmp.eq.s32.totalorder %s1290_s6, 0  ;;  %p1292_p2 = scmp.ge.s32.totalorder %s1672_s29, 1 }
   0xa   : > { %p207_p3 = scmp.lt.s32.totalorder %s1672_s29, 3  ;;  %s232_s11 = sshll.u32 %s2738_s3, 4  ;;  %s233_s11 = int_to_ptr.vmem [resolvable:$true] %s232_s11 }
   0xb   : > { %p1758_p4 = por %p1750_p1, %p44_p0  ;;  %s222_s15 = sshll.u32 %s2737_s2, 4  ;;  %s223_s15 = int_to_ptr.vmem [resolvable:$true] %s222_s15 }
   0xc   : > { %p1765_p5 = pnand %p1292_p2, %p207_p3  ;;  %s242_s18 = sshll.u32 %s2739_s4, 4  ;;  %s243_s18 = int_to_ptr.vmem [resolvable:$true] %s242_s18 }
   0xd   : > { %s252_s21 = sshll.u32 %s2740_s5, 4  ;;  %s1674_s22 = smov [#allocation7]   ;;  %s253_s21 = int_to_ptr.vmem [resolvable:$true] %s252_s21 }
   0xe   : > { %p1368_p6 = pneg %p1765_p5  ;;  %s1675_s23 = smov [#allocation6]  }
   0xf   : > { %s1676_s24 = smov [#allocation9]   ;;  %s1677_s25 = smov [#allocation10]  }
  0x10   : > { %p1369_p7 = pnand %p1368_p6, %p1750_p1  ;;  %s1783_s26 = sadd.s32 1, %s1672_s29  }
  0x11   : > { %s28_s9 = ssub.s32 %s1672_s29, %s1783_s26  ;;  %s31_s10 = sadd.s32 1, %s1668_s28 }
  0x12   : > { %1374 = dma.vmem_to_smem (!%p1369_p7), %s233_s11, 32, %s1674_s22, [#allocation8]  }
  0x13   : > { %1371 = dma.vmem_to_smem (!%p1369_p7), %s223_s15, 16, %s1675_s23, [#allocation5]  }
  0x14   : > { %1377 = dma.vmem_to_smem (!%p1369_p7), %s243_s18, 16, %s1676_s24, [#allocation8]  }
  0x15   : > { %1380 = dma.vmem_to_smem (!%p1369_p7), %s253_s21, 16, %s1677_s25, [#allocation11]  }
  0x16   : > { %p29_p8 = scmp.eq.s32.totalorder %s28_s9, 0  ;;  %p38_p9 = scmp.ne.s32.totalorder %s1668_s28, %s1664_s27 }
  0x17   : > { %p39_p10 = scmp.eq.s32.totalorder %s1672_s29, 0  ;;  %p1389_p12 = scmp.lt.s32.totalorder %s1672_s29, 2 }
  0x18   : > { %s1792_s13 = scalar_select %p29_p8, %s1668_s28, %s31_s10  }
  0x19   : > { %p40_p11 = por %p39_p10, %p38_p9  ;;  %s266_s11 = sand.u32 1, %s1668_s28  }
  0x1a   : > { %s1349_s14 = sshll.u32 %s1672_s29, 5  ;;  %s1298_s15 = sshll.u32 %s266_s11, 5 }
  0x1b   : > { %s275_s18 = scalar_lea.hbm %s2735_s0, %s1349_s14  ;;  %s270_s20 = scalar_lea.vmem [#allocation3], %s1298_s15 }
  0x1c   : > { %s276_s19 = sshll.u32 %s275_s18, 4  ;;  %s278_s21 = sshll.u32 %s270_s20, 4  ;;  %s277_s19 = int_to_ptr.hbm [resolvable:$true] %s276_s19  ;;  %s279_s21 = int_to_ptr.vmem [resolvable:$true] %s278_s21 }
  0x1d   : > { %p1800_p13 = pnand %p1389_p12, %p40_p11  ;;  %s267_s23 = scalar_lea.sflag [#allocation4], %s266_s11 }
  0x1e   : > { %s1596_s24 = sshra.s32 %s277_s19, 4  ;;  %s1603_s14 = scalar_lea.hbm %s2735_s0, 64  ;;  %s1597_s24 = int_to_ptr.hbm [resolvable:$true] %s1596_s24 }
  0x1f   : > { %s1598_s25 = scalar_lea.hbm %s1597_s24, 32  ;;  %p1600_p2 = pneg %p1800_p13 }
  0x20   : > { %p1599_p0 = scmp.ne.s32.totalorder %s1597_s24, %s1598_s25  ;;  %p1604_p7 = scmp.lt.s32.totalorder %s1597_s24, %s2735_s0 }
  0x21   : > { %p1605_p8 = scmp.lt.s32.totalorder %s1603_s14, %s1598_s25 }
  0x22   : > { %p1601_p3 = pnand %p1600_p2, %p1599_p0 }
  0x23   : > { %p1606_p9 = por %p1605_p8, %p1604_p7 }
  0x24   : > { %p1602_p6 = pneg %p1601_p3 }
  0x26   : > { %p1607_p10 = pnand %p1606_p9, %p1602_p6 }
  0x28   : > { %1610 = shalt.err (!%p1607_p10)
}
  0x29   : > { %s1678_s11 = smov 128   ;;  %s1679_s17 = smov 8  }
  0x2a   : > { %1384 = dma.hbm_to_vmem [thread:$0]  (!%p1800_p13), %s277_s19, 512, %s279_s21, %s267_s23, %s1678_s11, %s1678_s11, %s1679_s17  }
  0x2b   : > { %290 = sbr.rel (%p1765_p5) target bundleno = 801 (0x321), region = 48  ;;  %s292_s18 = sand.u32 (!%p1765_p5), 1, %s1664_s27  }
  0x2c   : > { %s1302_s20 = sshll.u32 (!%p1765_p5), %s292_s18, 5  ;;  %s293_s9 = scalar_lea.sflag (!%p1765_p5), [#allocation4], %s292_s18 }
  0x2d   : > { %s296_s10 = scalar_lea.vmem (!%p1765_p5), [#allocation3], %s1302_s20 }
  0x30   : > { %1643 = dma.done.wait (%p1758_p4), %s293_s9, 512  }
  0x31   : > { %1645 = vsyncadd (%p1758_p4), %s293_s9, 4294966784 }
  0x32   : > { %1647 = dma.done.wait (%p1750_p1), [#allocation5], 16  }
  0x33   : > { %1649 = vsyncadd (%p1750_p1), [#allocation5], 4294967280 }
  0x34   : > { %1651 = dma.done.wait (%p1750_p1), [#allocation8], 48  }
  0x35   : > { %1653 = vsyncadd (%p1750_p1), [#allocation8], 4294967248 }
  0x36   : > { %1655 = dma.done.wait (%p1750_p1), [#allocation11], 16  }
  0x37   : > { %1657 = vsyncadd (%p1750_p1), [#allocation11], 4294967280 }
  0x38   : > { %322 = sfence }
  0x39   : > { %v356_v0 = vld [vmem:[%s296_s10 + $0x10] sm:$0xff]  ;;  %v354_v1 = vld [vmem:[%s296_s10] sm:$0xff]  ;;  %s1680_s8 = smov 127   ;;  %v357_v2 = vld [vmem:[%s296_s10 + $0x18] sm:$0xff]  ;;  %s1681_s12 = smov 126   ;;  %v1683_v21 = vmov 0  }
  0x3a   : > { %362 = vrot.lane.b32.xlu1 %v356_v0, %s1680_s8  ;;  %358 = vrot.lane.b32.xlu0 %v354_v1, %s1680_s8  ;;  %v355_v3 = vld [vmem:[%s296_s10 + $0x8] sm:$0xff]  ;;  %s1682_s30 = smov 124   ;;  %v406_v20 = vld [vmem:[%s2736_s1] sm:$0xff]  ;;  %s1684_s22 = smov 120  }
  0x3b   : > { %1437 = vset.pattern.permute.xlu1 %v1683_v21  ;;  %1439 = vset.pattern.permute.xlu0 %v1683_v21  ;;  %v1318_v28 = vld [vmem:[%s2736_s1 + $0x10] sm:$0xff]  ;;  %v1324_v29 = vld [vmem:[%s2736_s1 + $0x18] sm:$0xff]  ;;  %v1312_v32 = vld [vmem:[%s2736_s1 + $0x8] sm:$0xff]  ;;  %s440_s11 = sld [smem:[#allocation6]]  ;;  %s1307_s16 = sshll.u32 %s1290_s6, 2 }
  0x3c   : > { %1438 = vset.pattern.permute.xlu2 %v1683_v21  ;;  %s1313_s17 = sld [smem:[#allocation6 + $0x1]]  ;;  %p350_p1 = scmp.lt.s32.totalorder %s1307_s16, 7 }
  0x3d   : > { %s1906_s18 = sld [smem:[#allocation7]] }
  0x3e   : > { %s1910_s20 = sld [smem:[#allocation7 + $0x80]]  ;;  %s2818_s16 = smov (!%p350_p1, %s1307_s16), 7 }
  0x3f   : > { %s1922_s9 = sld [smem:[#allocation7 + $0x1]] }
  0x40   : > { %s1924_s10 = sld [smem:[#allocation7 + $0x81]] }
  0x41   : > { %v1848_v42 = vstv %s440_s11  ;;  %s2213_s19 = sld [smem:[#allocation6 + $0x2]] }
  0x42   : > { %364 = vrot.lane.b32.xlu1 %v357_v2, %s1680_s8  ;;  %360 = vrot.lane.b32.xlu0 %v355_v3, %s1680_s8  ;;  %s1325_s8 = sld [smem:[#allocation6 + $0x3]] }
  0x43   : > { %s2320_s21 = sld [smem:[#allocation7 + $0x2]] }
  0x44   : > { %s2370_s23 = sld [smem:[#allocation9]] }
  0x45   : > { %s2384_s24 = sld [smem:[#allocation9 + $0x1]] }
  0x46   : > { %s2634_s25 = sld [smem:[#allocation10]] }
  0x47   : > { %s2646_s14 = sld [smem:[#allocation10 + $0x1]] }
  0x48   : > { %s2699_s15 = sld [smem:[#allocation2]] }
  0xac   : > { %v363_v4 = vpop.permute.xlu1 %362  ;;  %v359_v5 = vpop.permute.xlu0 %358 }
  0xad   : > { %v368_v6 = vmax.f32 %v356_v0, %v363_v4  ;;  %v366_v7 = vmax.f32 %v354_v1, %v359_v5 }
  0xaf   : > { %374 = vrot.lane.b32.xlu0 %v368_v6, %s1681_s12  ;;  %370 = vrot.lane.b32.xlu2 %v366_v7, %s1681_s12 }
  0xb4   : > { %v365_v8 = vpop.permute.xlu1 %364  ;;  %v361_v9 = vpop.permute.xlu0 %360 }
  0xb5   : > { %v369_v10 = vmax.f32 %v357_v2, %v365_v8  ;;  %v367_v11 = vmax.f32 %v355_v3, %v361_v9 }
  0xb7   : > { %376 = vrot.lane.b32.xlu1 %v369_v10, %s1681_s12  ;;  %372 = vrot.lane.b32.xlu2 %v367_v11, %s1681_s12  ;;  %s2057_s12 = sld [smem:[#allocation7 + $0x3]] }
 0x109   : > { %v371_v12 = vpop.permute.xlu2 %370 }
 0x10a   : > { %v378_v13 = vmax.f32 %v366_v7, %v371_v12 }
 0x10c   : > { %382 = vrot.lane.b32.xlu2 %v378_v13, %s1682_s30 }
 0x111   : > { %v373_v14 = vpop.permute.xlu2 %372 }
 0x112   : > { %v379_v15 = vmax.f32 %v367_v11, %v373_v14 }
 0x114   : > { %384 = vrot.lane.b32.xlu0 %v379_v15, %s1682_s30 }
 0x121   : > { %v375_v16 = vpop.permute.xlu0 %374 }
 0x122   : > { %v380_v17 = vmax.f32 %v368_v6, %v375_v16 }
 0x124   : > { %386 = vrot.lane.b32.xlu1 %v380_v17, %s1682_s30 }
 0x129   : > { %v377_v18 = vpop.permute.xlu1 %376 }
 0x12a   : > { %v381_v19 = vmax.f32 %v369_v10, %v377_v18 }
 0x12c   : > { %388 = vrot.lane.b32.xlu2 %v381_v19, %s1682_s30  ;;  %409 = vperm.xlu1 %1437, %v406_v20   ;;  %s2090_s30 = sld [smem:[#allocation7 + $0x83]] }
 0x166   : > { %v383_v22 = vpop.permute.xlu2 %382 }
 0x167   : > { %v390_v23 = vmax.f32 %v378_v13, %v383_v22 }
 0x169   : > { %394 = vrot.lane.b32.xlu0 %v390_v23, %s1684_s22 }
 0x186   : > { %v389_v24 = vpop.permute.xlu2 %388  ;;  %v385_v25 = vpop.permute.xlu0 %384 }
 0x187   : > { %v393_v26 = vmax.f32 %v381_v19, %v389_v24  ;;  %v391_v27 = vmax.f32 %v379_v15, %v385_v25  ;;  %v1878_v25 = vstv %s1313_s17 }
 0x189   : > { %400 = vrot.lane.b32.xlu0 %v393_v26, %s1684_s22  ;;  %396 = vrot.lane.b32.xlu1 %v391_v27, %s1684_s22 }
 0x191   : > { %651 = vperm.xlu0 %1439, %v1318_v28   ;;  %772 = vperm.xlu1 %1437, %v1324_v29  }
 0x196   : > { %v387_v30 = vpop.permute.xlu1 %386 }
 0x197   : > { %v392_v31 = vmax.f32 %v380_v17, %v387_v30 }
 0x199   : > { %398 = vrot.lane.b32.xlu2 %v392_v31, %s1684_s22  ;;  %s2327_s22 = sld [smem:[#allocation7 + $0x82]] }
 0x19e   : > { %v410_v34 = vpop.permute.xlu1 %409 }
 0x1a1   : > { %530 = vperm.xlu2 %1438, %v1312_v32  }
 0x1db   : > { %v395_v33 = vpop.permute.xlu0 %394 }
 0x1dc   : > { %v1845_v35 = vmax.f32 %v390_v23, %v395_v33 }
 0x1de   : > { %v412_v36 = vmul.f32 %v410_v34, %v1845_v35 }
 0x1e0   : > { %v416_v37 = vrot.slane %v412_v36, 4 }
 0x1e2   : > { %v417_v38 = vadd.f32 %v416_v37, %v412_v36 }
 0x1e4   : > { %v418_v39 = vrot.slane %v417_v38, 2 }
 0x1e6   : > { %v419_v40 = vadd.f32 %v418_v39, %v417_v38 }
 0x1e8   : > { %v420_v41 = vrot.slane %v419_v40, 1 }
 0x1ea   : > { %v421_v43 = vadd.f32 %v420_v41, %v419_v40 }
 0x1ec   : > { %v1851_v44 = vadd.f32 %v1848_v42, %v421_v43 }
 0x1ee   : > { %v1308_v45 = vmul.f32 -1.442695, %v1851_v44 }
 0x1f0   : > { %1440 = vpow2.f32 %v1308_v45 }
 0x1f3   : > { %v399_v46 = vpop.permute.xlu2 %398 }
 0x1f4   : > { %v1854_v47 = vmax.f32 %v392_v31, %v399_v46 }
 0x1f6   : > { %v1441_v48 = vpop.eup %1440  ;;  %v414_v49 = vmul.f32 %v410_v34, %v1854_v47 }
 0x1f7   : > { %v1857_v50 = vadd.f32 1.0, %v1441_v48 }
 0x1f8   : > { %v428_v51 = vrot.slane %v414_v49, 4 }
 0x1f9   : > { %1442 = vrcp.f32 %v1857_v50  ;;  %vm467_vm1 = vweird.f32 %v1857_v50 }
 0x1fa   : > { %v429_v52 = vadd.f32 %v428_v51, %v414_v49 }
 0x1fb   : > { %v531_v53 = vpop.permute.xlu2 %530  ;;  %v397_v54 = vpop.permute.xlu1 %396 }
 0x1fc   : > { %v430_v55 = vrot.slane %v429_v52, 2  ;;  %v533_v56 = vmul.f32 %v531_v53, %v1845_v35  ;;  %v535_v57 = vmul.f32 %v531_v53, %v1854_v47  ;;  %v1862_v58 = vmax.f32 %v391_v27, %v397_v54  ;;  %v401_v59 = vpop.permute.xlu0 %400 }
 0x1fd   : > { %v1864_v60 = vmax.f32 %v393_v26, %v401_v59 }
 0x1fe   : > { %v431_v61 = vadd.f32 %v430_v55, %v429_v52  ;;  %v537_v62 = vrot.slane %v533_v56, 4  ;;  %v549_v63 = vrot.slane %v535_v57, 4  ;;  %v413_v0 = vmul.f32 %v410_v34, %v1862_v58 }
 0x1ff   : > { %v534_v1 = vmul.f32 %v531_v53, %v1862_v58  ;;  %v415_v2 = vmul.f32 %v410_v34, %v1864_v60  ;;  %v536_v3 = vmul.f32 %v531_v53, %v1864_v60  ;;  %v1870_v6 = vpop.eup %1442 }
 0x200   : > { %v432_v4 = vrot.slane %v431_v61, 1  ;;  %v538_v5 = vadd.f32 %v537_v62, %v533_v56  ;;  %v550_v7 = vadd.f32 %v549_v63, %v535_v57  ;;  %v422_v8 = vrot.slane %v413_v0, 4 }
 0x201   : > { %v543_v9 = vrot.slane %v534_v1, 4  ;;  %v434_v10 = vrot.slane %v415_v2, 4  ;;  %v555_v13 = vrot.slane %v536_v3, 4  ;;  %v463_v18 = vmul.f32 %v1870_v6, %v1857_v50 }
 0x202   : > { %v433_v11 = vadd.f32 %v432_v4, %v431_v61  ;;  %v539_v12 = vrot.slane %v538_v5, 2  ;;  %v551_v14 = vrot.slane %v550_v7, 2  ;;  %v423_v15 = vadd.f32 %v422_v8, %v413_v0 }
 0x203   : > { %v544_v16 = vadd.f32 %v543_v9, %v534_v1  ;;  %v435_v17 = vadd.f32 %v434_v10, %v415_v2  ;;  %v556_v27 = vadd.f32 %v555_v13, %v536_v3  ;;  %v464_v32 = vsub.f32 1.0, %v463_v18  ;;  %v773_v8 = vpop.permute.xlu1 %772 }
 0x204   : > { %v1875_v19 = vadd.f32 %v1848_v42, %v433_v11  ;;  %v540_v20 = vadd.f32 %v539_v12, %v538_v5  ;;  %v552_v21 = vadd.f32 %v551_v14, %v550_v7  ;;  %v424_v22 = vrot.slane %v423_v15, 2 }
 0x205   : > { %v545_v23 = vrot.slane %v544_v16, 2  ;;  %v436_v26 = vrot.slane %v435_v17, 2  ;;  %v557_v34 = vrot.slane %v556_v27, 2  ;;  %v465_v46 = vmul.f32 %v1870_v6, %v464_v32 }
 0x206   : > { %v1310_v24 = vmul.f32 -1.442695, %v1875_v19  ;;  %v541_v28 = vrot.slane %v540_v20, 1  ;;  %v553_v29 = vrot.slane %v552_v21, 1  ;;  %v425_v30 = vadd.f32 %v424_v22, %v423_v15 }
 0x207   : > { %v546_v31 = vadd.f32 %v545_v23, %v544_v16  ;;  %v437_v33 = vadd.f32 %v436_v26, %v435_v17  ;;  %v558_v51 = vadd.f32 %v557_v34, %v556_v27  ;;  %vm468_vm0 = vweird.f32 %v1870_v6 }
 0x208   : > { %1444 = vpow2.f32 %v1310_v24  ;;  %v542_v36 = vadd.f32 %v541_v28, %v540_v20  ;;  %v554_v37 = vadd.f32 %v553_v29, %v552_v21  ;;  %v426_v38 = vrot.slane %v425_v30, 1  ;;  %vm1914_vm2 = vmor %vm467_vm1, %vm468_vm0 }
 0x209   : > { %v547_v39 = vrot.slane %v546_v31, 1  ;;  %v438_v40 = vrot.slane %v437_v33, 1  ;;  %v466_v62 = vadd.f32 %v1870_v6, %v465_v46  ;;  %v559_v0 = vrot.slane %v558_v51, 1 }
 0x20a   : > { %v1881_v41 = vadd.f32 %v1878_v25, %v542_v36  ;;  %v1884_v43 = vadd.f32 %v1878_v25, %v554_v37  ;;  %v427_v45 = vadd.f32 %v426_v38, %v425_v30  ;;  %v473_v1 = vand.u32 2147483648, %v1857_v50 }
 0x20b   : > { %v548_v48 = vadd.f32 %v547_v39, %v546_v31  ;;  %v439_v49 = vadd.f32 %v438_v40, %v437_v33  ;;  %v471_v2 = vand.u32 2147483647, %v1857_v50  ;;  %v470_v4 = vsel %vm1914_vm2, %v1870_v6, %v466_v62 }
 0x20c   : > { %v1314_v52 = vmul.f32 -1.442695, %v1881_v41  ;;  %v1316_v53 = vmul.f32 -1.442695, %v1884_v43  ;;  %v1890_v54 = vadd.f32 %v1848_v42, %v427_v45  ;;  %v560_v5 = vadd.f32 %v559_v0, %v558_v51  ;;  %v1983_v51 = vpop.permute.xlu0 %651 }
 0x20d   : > { %v1894_v56 = vadd.f32 %v1878_v25, %v548_v48  ;;  %v1900_v61 = vadd.f32 %v1848_v42, %v439_v49  ;;  %v474_v7 = vor.u32 1.1754944e-38, %v473_v1  ;;  %vm472_vm3 = vcmp.eq.f32.partialorder %v471_v2, 8.507059e+37 }
 0x20e   : > { %v1445_v55 = vpop.eup %1444  ;;  %1446 = vpow2.f32 %v1314_v52  ;;  %v1309_v59 = vmul.f32 -1.442695, %v1890_v54  ;;  %v1936_v15 = vadd.f32 %v1878_v25, %v560_v5  ;;  %v775_v16 = vmul.f32 %v773_v8, %v1845_v35 }
 0x20f   : > { %v1896_v57 = vadd.f32 1.0, %v1445_v55  ;;  %1448 = vpow2.f32 %v1316_v53  ;;  %v1315_v63 = vmul.f32 -1.442695, %v1894_v56  ;;  %v1311_v3 = vmul.f32 -1.442695, %v1900_v61 }
 0x210   : > { %v475_v12 = vsel %vm472_vm3, %v474_v7, %v470_v4  ;;  %v776_v22 = vmul.f32 %v773_v8, %v1862_v58  ;;  %v1945_v23 = vstv %s1906_s18  ;;  %v1950_v25 = vstv %s1910_s20  ;;  %s352_s18 = scalar_lea.vmem %s2742_s7, %s2818_s16 }
 0x211   : > { %1450 = vrcp.f32 %v1896_v57  ;;  %v522_v18 = vmul.f32 %v475_v12, %v1851_v44  ;;  %v1317_v26 = vmul.f32 -1.442695, %v1936_v15  ;;  %v779_v27 = vrot.slane %v775_v16, 4 }
 0x212   : > { %1452 = vpow2.f32 %v1309_v59  ;;  %v1956_v44 = vstv %s1922_s9  ;;  %v1959_v30 = vstv %s1924_s10  ;;  %v777_v31 = vmul.f32 %v773_v8, %v1854_v47 }
 0x213   : > { %1454 = vpow2.f32 %v1315_v63  ;;  %v1965_v33 = vmul.f32 %v1945_v23, %v522_v18  ;;  %v1967_v34 = vstv %s1325_s8  ;;  %v778_v36 = vmul.f32 %v773_v8, %v1864_v60 }
 0x214   : > { %v1447_v50 = vpop.eup %1446  ;;  %1456 = vpow2.f32 %v1311_v3  ;;  %v785_v37 = vrot.slane %v776_v22, 4  ;;  %v501_v39 = vand.u32 2147483647, %v1896_v57  ;;  %v503_v40 = vand.u32 2147483648, %v1896_v57 }
 0x215   : > { %v1449_v9 = vpop.eup %1448  ;;  %v1926_v10 = vadd.f32 1.0, %v1447_v50  ;;  %v1981_v49 = vadd.f32 %v779_v27, %v775_v16  ;;  %v791_v55 = vrot.slane %v777_v31, 4  ;;  %v1990_v62 = vmul.f32 %v1950_v25, %v522_v18 }
 0x216   : > { %v1930_v13 = vadd.f32 1.0, %v1449_v9  ;;  %vm497_vm5 = vweird.f32 %v1896_v57  ;;  %v786_v63 = vadd.f32 %v785_v37, %v776_v22  ;;  %v797_v0 = vrot.slane %v778_v36, 4 }
 0x217   : > { %v1928_v11 = vpop.eup %1450  ;;  %1458 = vrcp.f32 %v1926_v10  ;;  %vm1993_vm6 = vcmp.eq.f32.partialorder %v501_v39, 8.507059e+37  ;;  %v504_v2 = vor.u32 1.1754944e-38, %v503_v40  ;;  %v1999_v42 = vmul.f32 %v1983_v51, %v1845_v35 }
 0x218   : > { %v1453_v6 = vpop.eup %1452  ;;  %v493_v14 = vmul.f32 %v1928_v11, %v1896_v57  ;;  %1460 = vrcp.f32 %v1930_v13  ;;  %vm498_vm4 = vweird.f32 %v1928_v11  ;;  %v2003_v3 = vmul.f32 %v1983_v51, %v1862_v58 }
 0x219   : > { %v1455_v17 = vpop.eup %1454  ;;  %v1941_v21 = vadd.f32 1.0, %v1453_v6  ;;  %vm2005_vm7 = vmor %vm497_vm5, %vm498_vm4  ;;  %v592_v57 = vand.u32 2147483647, %v1926_v10  ;;  %v781_v50 = vrot.slane %v1981_v49, 2  ;;  %v2020_v9 = vadd.f32 %v791_v55, %v777_v31 }
 0x21a   : > { %v494_v20 = vsub.f32 1.0, %v493_v14  ;;  %v1947_v24 = vadd.f32 1.0, %v1455_v17  ;;  %v1457_v28 = vpop.eup %1456  ;;  %v594_v6 = vand.u32 2147483648, %v1926_v10  ;;  %v622_v14 = vand.u32 2147483647, %v1930_v13 }
 0x21b   : > { %1462 = vrcp.f32 %v1941_v21  ;;  %v1979_v48 = vadd.f32 1.0, %v1457_v28  ;;  %v787_v16 = vrot.slane %v786_v63, 2  ;;  %v2024_v17 = vadd.f32 %v797_v0, %v778_v36 }
 0x21c   : > { %v495_v29 = vmul.f32 %v1928_v11, %v494_v20  ;;  %1464 = vrcp.f32 %v1947_v24  ;;  %vm588_vm8 = vweird.f32 %v1926_v10  ;;  %vm618_vm9 = vweird.f32 %v1930_v13 }
 0x21d   : > { %v1962_v32 = vpop.eup %1458  ;;  %1466 = vpow2.f32 %v1317_v26  ;;  %v2031_v18 = vmul.f32 %v1983_v51, %v1854_v47  ;;  %vm2035_vm10 = vcmp.eq.f32.partialorder %v592_v57, 8.507059e+37  ;;  %v595_v36 = vor.u32 1.1754944e-38, %v594_v6 }
 0x21e   : > { %v1970_v38 = vpop.eup %1460  ;;  %v584_v45 = vmul.f32 %v1962_v32, %v1926_v10  ;;  %v496_v52 = vadd.f32 %v1928_v11, %v495_v29  ;;  %1468 = vrcp.f32 %v1979_v48  ;;  %vm589_vm11 = vweird.f32 %v1962_v32 }
 0x21f   : > { %v614_v46 = vmul.f32 %v1970_v38, %v1930_v13  ;;  %vm2048_vm12 = vcmp.eq.f32.partialorder %v622_v14, 8.507059e+37  ;;  %v488_v39 = vand.u32 2147483648, %v1941_v21  ;;  %v609_v40 = vand.u32 2147483648, %v1947_v24  ;;  %vm2061_vm14 = vmor %vm588_vm8, %vm589_vm11 }
 0x220   : > { %v585_v53 = vsub.f32 1.0, %v584_v45  ;;  %v500_v35 = vsel %vm2005_vm7, %v1928_v11, %v496_v52  ;;  %v624_v11 = vand.u32 2147483648, %v1930_v13  ;;  %vm482_vm13 = vweird.f32 %v1941_v21 }
 0x221   : > { %v1987_v59 = vpop.eup %1462  ;;  %v615_v5 = vsub.f32 1.0, %v614_v46  ;;  %v505_v20 = vsel %vm1993_vm6, %v504_v2, %v500_v35  ;;  %v486_v52 = vand.u32 2147483647, %v1941_v21  ;;  %vm619_vm15 = vweird.f32 %v1970_v38 }
 0x222   : > { %v2012_v7 = vpop.eup %1464  ;;  %v586_v58 = vmul.f32 %v1962_v32, %v585_v53  ;;  %v478_v8 = vmul.f32 %v1987_v59, %v1941_v21  ;;  %v524_v45 = vmul.f32 %v505_v20, %v1875_v19  ;;  %v625_v46 = vor.u32 1.1754944e-38, %v624_v11  ;;  %vm2083_vm0 = vmor %vm618_vm9, %vm619_vm15 }
 0x223   : > { %v1467_v12 = vpop.eup %1466  ;;  %v616_v26 = vmul.f32 %v1970_v38, %v615_v5  ;;  %v599_v27 = vmul.f32 %v2012_v7, %v1947_v24  ;;  %v607_v19 = vand.u32 2147483647, %v1947_v24  ;;  %v489_v4 = vor.u32 1.1754944e-38, %v488_v39 }
 0x224   : > { %v587_v28 = vadd.f32 %v1962_v32, %v586_v58  ;;  %v479_v29 = vsub.f32 1.0, %v478_v8  ;;  %v2044_v31 = vadd.f32 1.0, %v1467_v12  ;;  %v2046_v47 = vpop.eup %1468  ;;  %v2075_v57 = vor.u32 1.1754944e-38, %v609_v40 }
 0x225   : > { %v617_v55 = vadd.f32 %v1970_v38, %v616_v26  ;;  %v600_v0 = vsub.f32 1.0, %v599_v27  ;;  %v508_v10 = vmul.f32 %v2046_v47, %v1979_v48  ;;  %v782_v5 = vadd.f32 %v781_v50, %v1981_v49 }
 0x226   : > { %v591_v1 = vsel %vm2061_vm14, %v1962_v32, %v587_v28  ;;  %v480_v2 = vmul.f32 %v1987_v59, %v479_v29  ;;  %1470 = vrcp.f32 %v2044_v31  ;;  %v788_v35 = vadd.f32 %v787_v16, %v786_v63 }
 0x227   : > { %v2079_v58 = vmul.f32 %v1945_v23, %v524_v45  ;;  %vm483_vm1 = vweird.f32 %v1987_v59  ;;  %v516_v8 = vand.u32 2147483647, %v1979_v48  ;;  %v518_v12 = vand.u32 2147483648, %v1979_v48 }
 0x228   : > { %v2093_v49 = vmul.f32 %v1950_v25, %v524_v45  ;;  %v596_v63 = vsel %vm2035_vm10, %v595_v36, %v591_v1  ;;  %v621_v13 = vsel %vm2083_vm0, %v1970_v38, %v617_v55  ;;  %vm2100_vm2 = vcmp.eq.f32.partialorder %v486_v52, 8.507059e+37  ;;  %vm2125_vm6 = vmor %vm482_vm13, %vm483_vm1 }
 0x229   : > { %vm603_vm3 = vweird.f32 %v1947_v24  ;;  %v783_v6 = vrot.slane %v782_v5, 1  ;;  %v481_v14 = vadd.f32 %v1987_v59, %v480_v2  ;;  %v601_v16 = vmul.f32 %v2012_v7, %v600_v0 }
 0x22a   : > { %v509_v11 = vsub.f32 1.0, %v508_v10  ;;  %v789_v20 = vrot.slane %v788_v35, 1  ;;  %vm604_vm4 = vweird.f32 %v2012_v7  ;;  %v793_v26 = vrot.slane %v2020_v9, 2 }
 0x22b   : > { %v784_v22 = vadd.f32 %v783_v6, %v782_v5  ;;  %v799_v38 = vrot.slane %v2024_v17, 2  ;;  %v626_v28 = vsel %vm2048_vm12, %v625_v46, %v621_v13  ;;  %vm512_vm5 = vweird.f32 %v1979_v48  ;;  %vm2169_vm10 = vmor %vm603_vm3, %vm604_vm4 }
 0x22c   : > { %v2110_v27 = vpop.eup %1470  ;;  %v2115_v29 = vor.u32 1.1754944e-38, %v518_v12  ;;  %v2118_v36 = vstv %s2057_s12  ;;  %v790_v39 = vadd.f32 %v789_v20, %v788_v35  ;;  %v643_v40 = vmul.f32 %v596_v63, %v1881_v41 }
 0x22d   : > { %vm2129_vm7 = vcmp.eq.f32.partialorder %v607_v19, 8.507059e+37  ;;  %v794_v46 = vadd.f32 %v793_v26, %v2020_v9  ;;  %v800_v52 = vadd.f32 %v799_v38, %v2024_v17  ;;  %v2136_v53 = vadd.f32 %v1967_v34, %v784_v22 }
 0x22e   : > { %v485_v41 = vsel %vm2125_vm6, %v1987_v59, %v481_v14  ;;  %v602_v21 = vadd.f32 %v2012_v7, %v601_v16  ;;  %v510_v55 = vmul.f32 %v2046_v47, %v509_v11  ;;  %v2144_v0 = vadd.f32 %v1967_v34, %v790_v39 }
 0x22f   : > { %v629_v19 = vmul.f32 %v2110_v27, %v2044_v31  ;;  %v795_v9 = vrot.slane %v794_v46, 1  ;;  %v801_v1 = vrot.slane %v800_v52, 1  ;;  %v1326_v17 = vmul.f32 -1.442695, %v2136_v53 }
 0x230   : > { %v645_v2 = vmul.f32 %v626_v28, %v1884_v43  ;;  %v2151_v10 = vstv %s2090_s30  ;;  %v1327_v59 = vmul.f32 -1.442695, %v2144_v0  ;;  %v658_v5 = vrot.slane %v1999_v42, 4 }
 0x231   : > { %vm513_vm8 = vweird.f32 %v2046_v47  ;;  %vm2156_vm9 = vcmp.eq.f32.partialorder %v516_v8, 8.507059e+37  ;;  %v796_v32 = vadd.f32 %v795_v9, %v794_v46  ;;  %v802_v12 = vadd.f32 %v801_v1, %v800_v52 }
 0x232   : > { %1472 = vpow2.f32 %v1326_v17  ;;  %v2161_v63 = vmul.f32 %v1956_v44, %v643_v40  ;;  %v490_v43 = vsel %vm2100_vm2, %v489_v4, %v485_v41  ;;  %v511_v8 = vadd.f32 %v2046_v47, %v510_v55  ;;  %vm2196_vm11 = vmor %vm512_vm5, %vm513_vm8 }
 0x233   : > { %1474 = vpow2.f32 %v1327_v59  ;;  %v606_v6 = vsel %vm2169_vm10, %v2012_v7, %v602_v21  ;;  %v630_v14 = vsub.f32 1.0, %v629_v19  ;;  %v2178_v16 = vadd.f32 %v1967_v34, %v796_v32 }
 0x234   : > { %v2181_v4 = vadd.f32 %v1967_v34, %v802_v12  ;;  %v2184_v24 = vmul.f32 %v1956_v44, %v645_v2  ;;  %v2187_v50 = vmul.f32 %v1959_v30, %v643_v40  ;;  %v657_v11 = vmul.f32 %v1983_v51, %v1864_v60 }
 0x235   : > { %v659_v20 = vadd.f32 %v658_v5, %v1999_v42  ;;  %vm633_vm12 = vweird.f32 %v2044_v31  ;;  %v1328_v34 = vmul.f32 -1.442695, %v2178_v16  ;;  %v664_v26 = vrot.slane %v2003_v3, 4 }
 0x236   : > { %v1329_v22 = vmul.f32 -1.442695, %v2181_v4  ;;  %v670_v60 = vrot.slane %v2031_v18, 4  ;;  %v523_v51 = vmul.f32 %v490_v43, %v1890_v54  ;;  %v611_v48 = vsel %vm2129_vm7, %v2075_v57, %v606_v6 }
 0x237   : > { %v515_v42 = vsel %vm2196_vm11, %v2046_v47, %v511_v8  ;;  %v660_v38 = vrot.slane %v659_v20, 2  ;;  %v631_v39 = vmul.f32 %v2110_v27, %v630_v14  ;;  %1476 = vpow2.f32 %v1328_v34 }
 0x238   : > { %v1473_v28 = vpop.eup %1472  ;;  %v665_v40 = vadd.f32 %v664_v26, %v2003_v3  ;;  %v671_v45 = vadd.f32 %v670_v60, %v2031_v18  ;;  %v637_v46 = vand.u32 2147483647, %v2044_v31  ;;  %1478 = vpow2.f32 %v1329_v22 }
 0x239   : > { %v1475_v54 = vpop.eup %1474  ;;  %v2218_v57 = vadd.f32 1.0, %v1473_v28  ;;  %v676_v37 = vrot.slane %v657_v11, 4  ;;  %v661_v47 = vadd.f32 %v660_v38, %v659_v20  ;;  %v644_v55 = vmul.f32 %v611_v48, %v1894_v56 }
 0x23a   : > { %v2220_v52 = vadd.f32 1.0, %v1475_v54  ;;  %v666_v41 = vrot.slane %v665_v40, 2  ;;  %v672_v21 = vrot.slane %v671_v45, 2  ;;  %v520_v3 = vsel %vm2156_vm9, %v2115_v29, %v515_v42 }
 0x23b   : > { %v639_v18 = vand.u32 2147483648, %v2044_v31  ;;  %1480 = vrcp.f32 %v2218_v57  ;;  %v1021_v19 = vmul.f32 %v1959_v30, %v645_v2  ;;  %v632_v9 = vadd.f32 %v2110_v27, %v631_v39 }
 0x23c   : > { %vm634_vm13 = vweird.f32 %v2110_v27  ;;  %1482 = vrcp.f32 %v2220_v52  ;;  %v892_v1 = vmul.f32 %v1945_v23, %v523_v51  ;;  %v1014_v56 = vmul.f32 %v1950_v25, %v523_v51 }
 0x23d   : > { %v662_v17 = vrot.slane %v661_v47, 1  ;;  %v667_v59 = vadd.f32 %v666_v41, %v665_v40  ;;  %v1477_v29 = vpop.eup %1476  ;;  %v525_v5 = vmul.f32 %v520_v3, %v1900_v61  ;;  %vm2235_vm14 = vcmp.eq.f32.partialorder %v637_v46, 8.507059e+37  ;;  %vm2243_vm15 = vmor %vm633_vm12, %vm634_vm13 }
 0x23e   : > { %v673_v2 = vadd.f32 %v672_v21, %v671_v45  ;;  %v677_v32 = vadd.f32 %v676_v37, %v657_v11  ;;  %v1479_v12 = vpop.eup %1478  ;;  %v898_v43 = vmul.f32 %v1956_v44, %v644_v55  ;;  %v1020_v13 = vmul.f32 %v1959_v30, %v644_v55 }
 0x23f   : > { %v640_v6 = vor.u32 1.1754944e-38, %v639_v18  ;;  %v2247_v14 = vadd.f32 1.0, %v1477_v29  ;;  %v636_v61 = vsel %vm2243_vm15, %v2110_v27, %v632_v9  ;;  %v2252_v20 = vadd.f32 1.0, %v1479_v12 }
 0x240   : > { %v683_v11 = vstv %s2213_s19  ;;  %v668_v7 = vrot.slane %v667_v59, 1  ;;  %v663_v31 = vadd.f32 %v662_v17, %v661_v47  ;;  %v674_v22 = vrot.slane %v673_v2, 1 }
 0x241   : > { %v2255_v34 = vpop.eup %1480  ;;  %1484 = vrcp.f32 %v2247_v14  ;;  %v678_v26 = vrot.slane %v677_v32, 2  ;;  %v2261_v51 = vmul.f32 %v1945_v23, %v525_v5  ;;  %v2264_v48 = vmul.f32 %v1950_v25, %v525_v5 }
 0x242   : > { %v2258_v60 = vpop.eup %1482  ;;  %v826_v27 = vmul.f32 %v2255_v34, %v2218_v57  ;;  %1486 = vrcp.f32 %v2252_v20  ;;  %v641_v42 = vsel %vm2235_vm14, %v640_v6, %v636_v61  ;;  %v2275_v28 = vadd.f32 %v2161_v63, %v1965_v33 }
 0x243   : > { %v841_v38 = vmul.f32 %v2258_v60, %v2220_v52  ;;  %v2279_v23 = vadd.f32 %v2184_v24, %v2079_v58  ;;  %v2281_v39 = vadd.f32 %v898_v43, %v892_v1  ;;  %v2285_v40 = vadd.f32 %v2187_v50, %v1990_v62 }
 0x244   : > { %v827_v25 = vsub.f32 1.0, %v826_v27  ;;  %v669_v45 = vadd.f32 %v668_v7, %v667_v59  ;;  %v675_v46 = vadd.f32 %v674_v22, %v673_v2  ;;  %v679_v37 = vadd.f32 %v678_v26, %v677_v32 }
 0x245   : > { %v842_v54 = vsub.f32 1.0, %v841_v38  ;;  %v2287_v47 = vadd.f32 %v683_v11, %v663_v31  ;;  %v2290_v33 = vmul.f32 %v641_v42, %v1936_v15  ;;  %v2292_v63 = vadd.f32 %v1020_v13, %v1014_v56 }
 0x246   : > { %v2295_v58 = vadd.f32 %v1021_v19, %v2093_v49  ;;  %v2297_v24 = vadd.f32 %v683_v11, %v669_v45  ;;  %v828_v62 = vmul.f32 %v2255_v34, %v827_v25  ;;  %v680_v50 = vrot.slane %v679_v37, 1 }
 0x247   : > { %v2299_v41 = vpop.eup %1484  ;;  %v2302_v21 = vadd.f32 %v683_v11, %v675_v46  ;;  %v1320_v55 = vmul.f32 -1.442695, %v2287_v47  ;;  %v834_v15 = vand.u32 2147483647, %v2218_v57  ;;  %v843_v18 = vmul.f32 %v2258_v60, %v842_v54 }
 0x248   : > { %v2305_v3 = vpop.eup %1486  ;;  %v856_v49 = vmul.f32 %v2299_v41, %v2247_v14  ;;  %v1321_v19 = vmul.f32 -1.442695, %v2297_v24  ;;  %v836_v9 = vand.u32 2147483648, %v2218_v57  ;;  %v849_v1 = vand.u32 2147483647, %v2220_v52 }
 0x249   : > { %v871_v56 = vmul.f32 %v2305_v3, %v2252_v20  ;;  %v681_v17 = vadd.f32 %v680_v50, %v679_v37  ;;  %v851_v59 = vand.u32 2147483648, %v2220_v52  ;;  %1488 = vpow2.f32 %v1320_v55 }
 0x24a   : > { %v857_v29 = vsub.f32 1.0, %v856_v49  ;;  %v1322_v5 = vmul.f32 -1.442695, %v2302_v21  ;;  %v829_v35 = vadd.f32 %v2255_v34, %v828_v62  ;;  %vm831_vm0 = vweird.f32 %v2255_v34 }
 0x24b   : > { %v872_v2 = vsub.f32 1.0, %v871_v56  ;;  %v2322_v32 = vadd.f32 %v683_v11, %v681_v17  ;;  %vm830_vm1 = vweird.f32 %v2218_v57  ;;  %v844_v12 = vadd.f32 %v2258_v60, %v843_v18 }
 0x24c   : > { %vm846_vm2 = vweird.f32 %v2258_v60  ;;  %1490 = vpow2.f32 %v1321_v19  ;;  %v858_v43 = vmul.f32 %v2299_v41, %v857_v29  ;;  %v900_v6 = vmul.f32 %v1956_v44, %v2290_v33  ;;  %vm2334_vm3 = vmor %vm830_vm1, %vm831_vm0 }
 0x24d   : > { %v873_v13 = vmul.f32 %v2305_v3, %v872_v2  ;;  %1492 = vpow2.f32 %v1322_v5  ;;  %v1323_v8 = vmul.f32 -1.442695, %v2322_v32  ;;  %vm2338_vm4 = vcmp.eq.f32.partialorder %v834_v15, 8.507059e+37 }
 0x24e   : > { %v837_v11 = vor.u32 1.1754944e-38, %v836_v9  ;;  %vm845_vm5 = vweird.f32 %v2220_v52  ;;  %v833_v7 = vsel %vm2334_vm3, %v2255_v34, %v829_v35  ;;  %vm2350_vm7 = vcmp.eq.f32.partialorder %v849_v1, 8.507059e+37 }
 0x24f   : > { %vm2346_vm6 = vmor %vm845_vm5, %vm846_vm2  ;;  %v852_v22 = vor.u32 1.1754944e-38, %v851_v59  ;;  %1494 = vpow2.f32 %v1323_v8  ;;  %v1489_v26 = vpop.eup %1488  ;;  %vm860_vm8 = vweird.f32 %v2247_v14  ;;  %vm861_vm9 = vweird.f32 %v2299_v41 }
 0x250   : > { %v848_v27 = vsel %vm2346_vm6, %v2258_v60, %v844_v12  ;;  %v864_v52 = vand.u32 2147483647, %v2247_v14  ;;  %v859_v34 = vadd.f32 %v2299_v41, %v858_v43  ;;  %v874_v42 = vadd.f32 %v2305_v3, %v873_v13  ;;  %vm2376_vm12 = vmor %vm860_vm8, %vm861_vm9 }
 0x251   : > { %vm876_vm10 = vweird.f32 %v2305_v3  ;;  %v2363_v38 = vadd.f32 1.0, %v1489_v26  ;;  %v838_v60 = vsel %vm2338_vm4, %v837_v11, %v833_v7  ;;  %v866_v45 = vand.u32 2147483648, %v2247_v14 }
 0x252   : > { %v1491_v25 = vpop.eup %1490  ;;  %vm875_vm11 = vweird.f32 %v2252_v20  ;;  %v881_v54 = vand.u32 2147483648, %v2252_v20  ;;  %v853_v37 = vsel %vm2350_vm7, %v852_v22, %v848_v27  ;;  %v879_v50 = vand.u32 2147483647, %v2252_v20 }
 0x253   : > { %v1493_v46 = vpop.eup %1492  ;;  %v2381_v55 = vadd.f32 1.0, %v1491_v25  ;;  %1496 = vrcp.f32 %v2363_v38  ;;  %v1022_v15 = vmul.f32 %v1959_v30, %v2290_v33  ;;  %vm2390_vm13 = vmor %vm875_vm11, %vm876_vm10  ;;  %v2395_v14 = vstv %s2320_s21 }
 0x254   : > { %v2398_v49 = vstv %s2327_s22  ;;  %v2400_v20 = vadd.f32 1.0, %v1493_v46  ;;  %v863_v9 = vsel %vm2376_vm12, %v2299_v41, %v859_v34  ;;  %v878_v30 = vsel %vm2390_vm13, %v2305_v3, %v874_v42 }
 0x255   : > { %v1495_v19 = vpop.eup %1494  ;;  %v885_v33 = vmul.f32 %v838_v60, %v2136_v53  ;;  %1498 = vrcp.f32 %v2381_v55  ;;  %v867_v1 = vor.u32 1.1754944e-38, %v866_v45  ;;  %v882_v56 = vor.u32 1.1754944e-38, %v881_v54 }
 0x256   : > { %v886_v17 = vmul.f32 %v853_v37, %v2144_v0  ;;  %v2411_v59 = vadd.f32 1.0, %v1495_v19  ;;  %vm865_vm14 = vcmp.eq.f32.partialorder %v864_v52, 8.507059e+37  ;;  %vm880_vm15 = vcmp.eq.f32.partialorder %v879_v50, 8.507059e+37 }
 0x257   : > { %v2414_v29 = vadd.f32 %v900_v6, %v2261_v51  ;;  %1500 = vrcp.f32 %v2400_v20  ;;  %v868_v41 = vsel %vm865_vm14, %v867_v1, %v863_v9  ;;  %v883_v3 = vsel %vm880_vm15, %v882_v56, %v878_v30 }
 0x258   : > { %v713_v53 = vand.u32 2147483647, %v2363_v38  ;;  %1502 = vrcp.f32 %v2411_v59  ;;  %v2420_v0 = vmul.f32 %v2118_v36, %v885_v33  ;;  %v2423_v35 = vmul.f32 %v2151_v10, %v885_v33 }
 0x259   : > { %v1497_v5 = vpop.eup %1496  ;;  %v2426_v2 = vadd.f32 %v1022_v15, %v2264_v48  ;;  %v715_v51 = vand.u32 2147483648, %v2363_v38  ;;  %v2430_v12 = vmul.f32 %v2118_v36, %v886_v17  ;;  %v2433_v43 = vmul.f32 %v2151_v10, %v886_v17 }
 0x25a   : > { %v705_v13 = vmul.f32 %v1497_v5, %v2363_v38  ;;  %v2437_v8 = vstv %s2370_s23  ;;  %v887_v61 = vmul.f32 %v868_v41, %v2178_v16  ;;  %v2441_v57 = vmul.f32 %v883_v3, %v2181_v4 }
 0x25b   : > { %v1499_v6 = vpop.eup %1498  ;;  %v728_v48 = vand.u32 2147483647, %v2381_v55  ;;  %v2445_v11 = vstv %s2384_s24  ;;  %vm709_vm0 = vweird.f32 %v2363_v38  ;;  %vm2448_vm1 = vcmp.eq.f32.partialorder %v713_v53, 8.507059e+37 }
 0x25c   : > { %v706_v7 = vsub.f32 1.0, %v705_v13  ;;  %v720_v44 = vmul.f32 %v1499_v6, %v2381_v55  ;;  %v716_v26 = vor.u32 1.1754944e-38, %v715_v51  ;;  %vm724_vm2 = vweird.f32 %v2381_v55 }
 0x25d   : > { %v1501_v22 = vpop.eup %1500  ;;  %v730_v16 = vand.u32 2147483648, %v2381_v55  ;;  %vm739_vm3 = vweird.f32 %v2400_v20  ;;  %vm710_vm4 = vweird.f32 %v1497_v5  ;;  %vm2457_vm5 = vcmp.eq.f32.partialorder %v728_v48, 8.507059e+37 }
 0x25e   : > { %v1503_v4 = vpop.eup %1502  ;;  %v707_v27 = vmul.f32 %v1497_v5, %v706_v7  ;;  %v721_v52 = vsub.f32 1.0, %v720_v44  ;;  %v735_v34 = vmul.f32 %v1501_v22, %v2400_v20  ;;  %v743_v25 = vand.u32 2147483647, %v2400_v20  ;;  %vm711_vm7 = vmor %vm709_vm0, %vm710_vm4 }
 0x25f   : > { %v745_v60 = vand.u32 2147483648, %v2400_v20  ;;  %v750_v45 = vmul.f32 %v1503_v4, %v2411_v59  ;;  %vm725_vm6 = vweird.f32 %v1499_v6  ;;  %v731_v62 = vor.u32 1.1754944e-38, %v730_v16 }
 0x260   : > { %v708_v54 = vadd.f32 %v1497_v5, %v707_v27  ;;  %v722_v46 = vmul.f32 %v1499_v6, %v721_v52  ;;  %v736_v37 = vsub.f32 1.0, %v735_v34  ;;  %vm754_vm8 = vweird.f32 %v2411_v59  ;;  %vm726_vm10 = vmor %vm724_vm2, %vm725_vm6 }
 0x261   : > { %v751_v50 = vsub.f32 1.0, %v750_v45  ;;  %v760_v15 = vand.u32 2147483648, %v2411_v59  ;;  %vm740_vm9 = vweird.f32 %v1501_v22  ;;  %vm755_vm11 = vweird.f32 %v1503_v4 }
 0x262   : > { %v712_v18 = vsel %vm711_vm7, %v1497_v5, %v708_v54  ;;  %v723_v19 = vadd.f32 %v1499_v6, %v722_v46  ;;  %v737_v9 = vmul.f32 %v1501_v22, %v736_v37  ;;  %v758_v38 = vand.u32 2147483647, %v2411_v59  ;;  %vm741_vm13 = vmor %vm739_vm3, %vm740_vm9 }
 0x263   : > { %v717_v30 = vsel %vm2448_vm1, %v716_v26, %v712_v18  ;;  %v752_v33 = vmul.f32 %v1503_v4, %v751_v50  ;;  %vm744_vm12 = vcmp.eq.f32.partialorder %v743_v25, 8.507059e+37  ;;  %v746_v3 = vor.u32 1.1754944e-38, %v745_v60  ;;  %vm756_vm14 = vmor %vm754_vm8, %vm755_vm11 }
 0x264   : > { %v727_v1 = vsel %vm726_vm10, %v1499_v6, %v723_v19  ;;  %v738_v56 = vadd.f32 %v1501_v22, %v737_v9  ;;  %v764_v17 = vmul.f32 %v717_v30, %v2287_v47  ;;  %v761_v5 = vor.u32 1.1754944e-38, %v760_v15 }
 0x265   : > { %v732_v41 = vsel %vm2457_vm5, %v731_v62, %v727_v1  ;;  %v753_v53 = vadd.f32 %v1503_v4, %v752_v33  ;;  %v919_v47 = vmul.f32 %v2118_v36, %v887_v61  ;;  %vm759_vm15 = vcmp.eq.f32.partialorder %v758_v38, 8.507059e+37 }
 0x266   : > { %v742_v55 = vsel %vm741_vm13, %v1501_v22, %v738_v56  ;;  %v765_v51 = vmul.f32 %v732_v41, %v2297_v24  ;;  %v907_v13 = vmul.f32 %v2395_v14, %v764_v17  ;;  %v1029_v6 = vmul.f32 %v2398_v49, %v764_v17 }
 0x267   : > { %v747_v48 = vsel %vm744_vm12, %v746_v3, %v742_v55  ;;  %v757_v7 = vsel %vm756_vm14, %v1503_v4, %v753_v53  ;;  %v1041_v59 = vmul.f32 %v2151_v10, %v887_v61 }
 0x268   : > { %v762_v20 = vsel %vm759_vm15, %v761_v5, %v757_v7  ;;  %v766_v31 = vmul.f32 %v747_v48, %v2302_v21  ;;  %v908_v44 = vmul.f32 %v2395_v14, %v765_v51  ;;  %v911_v22 = vadd.f32 %v907_v13, %v2275_v28 }
 0x269   : > { %v767_v24 = vmul.f32 %v762_v20, %v2322_v32  ;;  %v1030_v26 = vmul.f32 %v2398_v49, %v765_v51  ;;  %v1033_v16 = vadd.f32 %v1029_v6, %v2285_v40 }
 0x26a   : > { %v909_v27 = vmul.f32 %v2395_v14, %v766_v31  ;;  %v912_v4 = vadd.f32 %v908_v44, %v2281_v39  ;;  %v921_v52 = vadd.f32 %v2420_v0, %v911_v22  ;;  %v1031_v21 = vmul.f32 %v2398_v49, %v766_v31 }
 0x26b   : > { %v910_v34 = vmul.f32 %v2395_v14, %v767_v24  ;;  %v1032_v28 = vmul.f32 %v2398_v49, %v767_v24  ;;  %v1034_v61 = vadd.f32 %v1030_v26, %v2292_v63  ;;  %v1043_v32 = vadd.f32 %v2423_v35, %v1033_v16 }
 0x26c   : > { %v913_v42 = vadd.f32 %v909_v27, %v2279_v23  ;;  %v922_v40 = vadd.f32 %v2430_v12, %v912_v4  ;;  %v1035_v25 = vadd.f32 %v1031_v21, %v2295_v58  ;;  %v2503_v39 = vadd.f32 %v2437_v8, %v921_v52 }
 0x26d   : > { %v920_v0 = vmul.f32 %v2118_v36, %v2441_v57  ;;  %v914_v14 = vadd.f32 %v910_v34, %v2414_v29  ;;  %v1044_v49 = vadd.f32 %v2433_v43, %v1034_v61  ;;  %v2510_v63 = vadd.f32 %v2445_v11, %v1043_v32 }
 0x26e   : > { %v923_v35 = vadd.f32 %v919_v47, %v913_v42  ;;  %v2513_v23 = vadd.f32 %v2437_v8, %v922_v40  ;;  %v1333_v12 = vmul.f32 -1.442695, %v2503_v39  ;;  %v1045_v58 = vadd.f32 %v1041_v59, %v1035_v25 }
 0x26f   : > { %v1036_v60 = vadd.f32 %v1032_v28, %v2426_v2  ;;  %v924_v45 = vadd.f32 %v920_v0, %v914_v14  ;;  %v2518_v54 = vadd.f32 %v2445_v11, %v1044_v49  ;;  %v1342_v36 = vmul.f32 -1.442695, %v2510_v63 }
 0x270   : > { %v2522_v29 = vadd.f32 %v2437_v8, %v923_v35  ;;  %1504 = vpow2.f32 %v1333_v12  ;;  %v1334_v43 = vmul.f32 -1.442695, %v2513_v23  ;;  %v2526_v46 = vadd.f32 %v2445_v11, %v1045_v58 }
 0x271   : > { %v2529_v37 = vadd.f32 %v2437_v8, %v924_v45  ;;  %1506 = vpow2.f32 %v1342_v36  ;;  %v1042_v2 = vmul.f32 %v2151_v10, %v2441_v57  ;;  %v1343_v50 = vmul.f32 -1.442695, %v2518_v54 }
 0x272   : > { %1508 = vpow2.f32 %v1334_v43  ;;  %v1335_v62 = vmul.f32 -1.442695, %v2522_v29  ;;  %v1344_v19 = vmul.f32 -1.442695, %v2526_v46 }
 0x273   : > { %v1336_v15 = vmul.f32 -1.442695, %v2529_v37  ;;  %v1046_v18 = vadd.f32 %v1042_v2, %v1036_v60 }
 0x274   : > { %1510 = vpow2.f32 %v1335_v62 }
 0x275   : > { %1512 = vpow2.f32 %v1336_v15  ;;  %v2538_v38 = vadd.f32 %v2445_v11, %v1046_v18 }
 0x276   : > { %v1505_v9 = vpop.eup %1504  ;;  %1514 = vpow2.f32 %v1343_v50 }
 0x277   : > { %v1507_v8 = vpop.eup %1506  ;;  %v943_v30 = vadd.f32 1.0, %v1505_v9  ;;  %1516 = vpow2.f32 %v1344_v19  ;;  %v1345_v11 = vmul.f32 -1.442695, %v2538_v38 }
 0x278   : > { %v1509_v33 = vpop.eup %1508  ;;  %v2540_v10 = vadd.f32 1.0, %v1507_v8 }
 0x279   : > { %v2542_v57 = vadd.f32 1.0, %v1509_v33  ;;  %1518 = vrcp.f32 %v943_v30  ;;  %v958_v5 = vand.u32 2147483648, %v943_v30  ;;  %v956_v47 = vand.u32 2147483647, %v943_v30 }
 0x27a   : > { %v1511_v1 = vpop.eup %1510  ;;  %1520 = vrcp.f32 %v2540_v10  ;;  %vm952_vm0 = vweird.f32 %v943_v30  ;;  %vm1074_vm2 = vweird.f32 %v2540_v10  ;;  %v1080_v60 = vand.u32 2147483648, %v2540_v10 }
 0x27b   : > { %v1513_v56 = vpop.eup %1512  ;;  %v2545_v17 = vadd.f32 1.0, %v1511_v1  ;;  %1522 = vrcp.f32 %v2542_v57  ;;  %v971_v48 = vand.u32 2147483647, %v2542_v57  ;;  %v973_v20 = vand.u32 2147483648, %v2542_v57 }
 0x27c   : > { %v1515_v41 = vpop.eup %1514  ;;  %v2548_v3 = vadd.f32 1.0, %v1513_v56  ;;  %v959_v22 = vor.u32 1.1754944e-38, %v958_v5  ;;  %vm967_vm1 = vweird.f32 %v2542_v57  ;;  %vm2578_vm3 = vcmp.eq.f32.partialorder %v956_v47, 8.507059e+37 }
 0x27d   : > { %1524 = vrcp.f32 %v2545_v17  ;;  %v1517_v53 = vpop.eup %1516  ;;  %v2555_v51 = vadd.f32 1.0, %v1515_v41  ;;  %v986_v26 = vand.u32 2147483647, %v2545_v17  ;;  %v988_v16 = vand.u32 2147483648, %v2545_v17 }
 0x27e   : > { %1526 = vrcp.f32 %v2548_v3  ;;  %vm2582_vm4 = vcmp.eq.f32.partialorder %v971_v48, 8.507059e+37  ;;  %vm982_vm5 = vweird.f32 %v2545_v17  ;;  %v2589_v32 = vadd.f32 1.0, %v1517_v53 }
 0x27f   : > { %v2553_v55 = vpop.eup %1518  ;;  %1528 = vpow2.f32 %v1345_v11  ;;  %v974_v42 = vor.u32 1.1754944e-38, %v973_v20  ;;  %vm997_vm8 = vweird.f32 %v2548_v3  ;;  %v1003_v58 = vand.u32 2147483648, %v2548_v3 }
 0x280   : > { %v2557_v13 = vpop.eup %1520  ;;  %v948_v6 = vmul.f32 %v2553_v55, %v943_v30  ;;  %1530 = vrcp.f32 %v2555_v51  ;;  %vm953_vm6 = vweird.f32 %v2553_v55  ;;  %vm2609_vm11 = vcmp.eq.f32.partialorder %v986_v26, 8.507059e+37 }
 0x281   : > { %v2561_v7 = vpop.eup %1522  ;;  %v1070_v31 = vmul.f32 %v2557_v13, %v2540_v10  ;;  %vm1075_vm9 = vweird.f32 %v2557_v13  ;;  %vm2603_vm10 = vmor %vm952_vm0, %vm953_vm6  ;;  %1532 = vrcp.f32 %v2589_v32  ;;  %v1001_v19 = vand.u32 2147483647, %v2548_v3 }
 0x282   : > { %v949_v44 = vsub.f32 1.0, %v948_v6  ;;  %v963_v59 = vmul.f32 %v2561_v7, %v2542_v57  ;;  %vm968_vm7 = vweird.f32 %v2561_v7  ;;  %v1078_v8 = vand.u32 2147483647, %v2540_v10  ;;  %vm2641_vm15 = vmor %vm1074_vm2, %vm1075_vm9 }
 0x283   : > { %v2570_v24 = vpop.eup %1524  ;;  %v1071_v27 = vsub.f32 1.0, %v1070_v31  ;;  %vm2617_vm12 = vmor %vm967_vm1, %vm968_vm7  ;;  %v989_v1 = vor.u32 1.1754944e-38, %v988_v16  ;;  %v1004_v56 = vor.u32 1.1754944e-38, %v1003_v58  ;;  %v1081_v5 = vor.u32 1.1754944e-38, %v1080_v60 }
 0x284   : > { %v2575_v4 = vpop.eup %1526  ;;  %v950_v52 = vmul.f32 %v2553_v55, %v949_v44  ;;  %v964_v34 = vsub.f32 1.0, %v963_v59  ;;  %v978_v61 = vmul.f32 %v2570_v24, %v2545_v17  ;;  %vm983_vm13 = vweird.f32 %v2570_v24 }
 0x285   : > { %v993_v40 = vmul.f32 %v2575_v4, %v2548_v3  ;;  %v1072_v25 = vmul.f32 %v2557_v13, %v1071_v27  ;;  %v1529_v0 = vpop.eup %1528  ;;  %vm998_vm14 = vweird.f32 %v2575_v4  ;;  %v1095_v6 = vand.u32 2147483648, %v2555_v51  ;;  %vm2659_vm0 = vmor %vm982_vm5, %vm983_vm13 }
 0x286   : > { %v951_v14 = vadd.f32 %v2553_v55, %v950_v52  ;;  %v965_v49 = vmul.f32 %v2561_v7, %v964_v34  ;;  %v979_v35 = vsub.f32 1.0, %v978_v61  ;;  %v1531_v50 = vpop.eup %1530  ;;  %v2623_v9 = vadd.f32 1.0, %v1529_v0  ;;  %vm2678_vm5 = vmor %vm997_vm8, %vm998_vm14 }
 0x287   : > { %v994_v12 = vsub.f32 1.0, %v993_v40  ;;  %v1073_v62 = vadd.f32 %v2557_v13, %v1072_v25  ;;  %v1085_v11 = vmul.f32 %v1531_v50, %v2555_v51  ;;  %vm2664_vm1 = vcmp.eq.f32.partialorder %v1001_v19, 8.507059e+37  ;;  %v1533_v31 = vpop.eup %1532 }
 0x288   : > { %v966_v36 = vadd.f32 %v2561_v7, %v965_v49  ;;  %v980_v43 = vmul.f32 %v2570_v24, %v979_v35  ;;  %v955_v30 = vsel %vm2603_vm10, %v2553_v55, %v951_v14  ;;  %v1093_v55 = vand.u32 2147483647, %v2555_v51 }
 0x289   : > { %v995_v18 = vmul.f32 %v2575_v4, %v994_v12  ;;  %v1077_v53 = vsel %vm2641_vm15, %v2557_v13, %v1073_v62  ;;  %v960_v10 = vsel %vm2578_vm3, %v959_v22, %v955_v30  ;;  %v1086_v20 = vsub.f32 1.0, %v1085_v11 }
 0x28a   : > { %v970_v33 = vsel %vm2617_vm12, %v2561_v7, %v966_v36  ;;  %v981_v57 = vadd.f32 %v2570_v24, %v980_v43  ;;  %vm1079_vm2 = vcmp.eq.f32.partialorder %v1078_v8, 8.507059e+37  ;;  %vm1089_vm3 = vweird.f32 %v2555_v51 }
 0x28b   : > { %v975_v47 = vsel %vm2582_vm4, %v974_v42, %v970_v33  ;;  %v996_v7 = vadd.f32 %v2575_v4, %v995_v18  ;;  %1534 = vrcp.f32 %v2623_v9  ;;  %v1082_v17 = vsel %vm1079_vm2, %v1081_v5, %v1077_v53 }
 0x28c   : > { %v985_v44 = vsel %vm2659_vm0, %v2570_v24, %v981_v57  ;;  %v1087_v22 = vmul.f32 %v1531_v50, %v1086_v20  ;;  %vm1090_vm4 = vweird.f32 %v1531_v50  ;;  %v1100_v59 = vmul.f32 %v1533_v31, %v2589_v32 }
 0x28d   : > { %v1007_v24 = vmul.f32 %v960_v10, %v2503_v39  ;;  %v1008_v16 = vmul.f32 %v975_v47, %v2513_v23  ;;  %vm2684_vm6 = vcmp.eq.f32.partialorder %v1093_v55, 8.507059e+37  ;;  %v1096_v52 = vor.u32 1.1754944e-38, %v1095_v6  ;;  %vm1091_vm7 = vmor %vm1089_vm3, %vm1090_vm4 }
 0x28e   : > { %v990_v21 = vsel %vm2609_vm11, %v989_v1, %v985_v44  ;;  %v1000_v3 = vsel %vm2678_vm5, %v2575_v4, %v996_v7  ;;  %v1088_v34 = vadd.f32 %v1531_v50, %v1087_v22  ;;  %v1101_v28 = vsub.f32 1.0, %v1100_v59 }
 0x28f   : > { %v1108_v39 = vand.u32 2147483647, %v2589_v32  ;;  %v1110_v23 = vand.u32 2147483648, %v2589_v32  ;;  %v1129_v61 = vmul.f32 %v1082_v17, %v2510_v63  ;;  %v1134_v42 = vstv %s2634_s25 }
 0x290   : > { %v1092_v40 = vsel %vm1091_vm7, %v1531_v50, %v1088_v34  ;;  %v1102_v25 = vmul.f32 %v1533_v31, %v1101_v28  ;;  %vm1105_vm8 = vweird.f32 %v1533_v31  ;;  %v1140_v0 = vstv %s2646_s14 }
 0x291   : > { %v1535_v14 = vpop.eup %1534  ;;  %v1009_v4 = vmul.f32 %v990_v21, %v2522_v29  ;;  %v1097_v51 = vsel %vm2684_vm6, %v1096_v52, %v1092_v40  ;;  %vm1104_vm9 = vweird.f32 %v2589_v32  ;;  %v1135_v49 = vmul.f32 %v1134_v42, %v1007_v24 }
 0x292   : > { %v1103_v35 = vadd.f32 %v1533_v31, %v1102_v25  ;;  %v1115_v12 = vmul.f32 %v1535_v14, %v2623_v9  ;;  %v1130_v63 = vmul.f32 %v1097_v51, %v2518_v54  ;;  %v1136_v58 = vmul.f32 %v1134_v42, %v1008_v16  ;;  %vm1106_vm10 = vmor %vm1104_vm9, %vm1105_vm8 }
 0x293   : > { %v1005_v60 = vsel %vm2664_vm1, %v1004_v56, %v1000_v3  ;;  %vm1109_vm11 = vcmp.eq.f32.partialorder %v1108_v39, 8.507059e+37  ;;  %v1111_v45 = vor.u32 1.1754944e-38, %v1110_v23  ;;  %v1141_v29 = vmul.f32 %v1140_v0, %v1129_v61 }
 0x294   : > { %v1107_v36 = vsel %vm1106_vm10, %v1533_v31, %v1103_v35  ;;  %v1116_v43 = vsub.f32 1.0, %v1115_v12  ;;  %v1123_v2 = vand.u32 2147483647, %v2623_v9  ;;  %v1142_v32 = vmul.f32 %v1140_v0, %v1130_v63 }
 0x295   : > { %v1112_v62 = vsel %vm1109_vm11, %v1111_v45, %v1107_v36  ;;  %vm1120_vm12 = vweird.f32 %v1535_v14  ;;  %v1125_v50 = vand.u32 2147483648, %v2623_v9  ;;  %v1137_v15 = vmul.f32 %v1134_v42, %v1009_v4 }
 0x296   : > { %v1117_v54 = vmul.f32 %v1535_v14, %v1116_v43  ;;  %v1131_v18 = vmul.f32 %v1112_v62, %v2526_v46  ;;  %v1145_v19 = vadd.f32 %v1141_v29, %v1135_v49  ;;  %v1146_v8 = vadd.f32 %v1142_v32, %v1136_v58 }
 0x297   : > { %v1150_v30 = vstv %s2699_s15  ;;  %v1010_v33 = vmul.f32 %v1005_v60, %v2529_v37  ;;  %vm1119_vm13 = vweird.f32 %v2623_v9  ;;  %vm1124_vm15 = vcmp.eq.f32.partialorder %v1123_v2, 8.507059e+37 }
 0x298   : > { %v1118_v57 = vadd.f32 %v1535_v14, %v1117_v54  ;;  %v1143_v1 = vmul.f32 %v1140_v0, %v1131_v18  ;;  %vm1121_vm14 = vmor %vm1119_vm13, %vm1120_vm12  ;;  %v1126_v56 = vor.u32 1.1754944e-38, %v1125_v50  ;;  %v1155_v41 = vlaneseq }
 0x299   : > { %v1151_v5 = vadd.f32 %v1150_v30, %v1145_v19  ;;  %v1152_v55 = vadd.f32 %v1150_v30, %v1146_v8  ;;  %vm1162_vm0 = vcmask 1041409   ;;  %v1138_v10 = vmul.f32 %v1134_v42, %v1010_v33 }
 0x29a   : > { %v1122_v11 = vsel %vm1121_vm14, %v1535_v14, %v1118_v57  ;;  %v1147_v53 = vadd.f32 %v1143_v1, %v1137_v15  ;;  %v1156_v48 = vand.u32 127, %v1155_v41  ;;  %vm1164_vm1 = vcmask 1042434  }
 0x29b   : > { %v1127_v6 = vsel %vm1124_vm15, %v1126_v56, %v1122_v11  ;;  %v1163_v7 = vsel %vm1162_vm0, %v1152_v55, %v1151_v5  ;;  %vm1166_vm2 = vcmask 1043459   ;;  %vm1170_vm4 = vcmask 1043456  }
 0x29c   : > { %v1132_v46 = vmul.f32 %v1127_v6, %v2538_v38  ;;  %v1153_v47 = vadd.f32 %v1150_v30, %v1147_v53  ;;  %vm1157_vm3 = vcmp.lt.s32.totalorder %v1156_v48, 113  ;;  %vm1183_vm5 = vcmask 0  }
 0x29e   : > { %v1144_v37 = vmul.f32 %v1140_v0, %v1132_v46  ;;  %v1165_v13 = vsel %vm1164_vm1, %v1153_v47, %v1163_v7 }
 0x2a0   : > { %v1148_v9 = vadd.f32 %v1144_v37, %v1138_v10 }
 0x2a2   : > { %v1154_v20 = vadd.f32 %v1150_v30, %v1148_v9 }
 0x2a4   : > { %v1167_v31 = vsel %vm1166_vm2, %v1154_v20, %v1165_v13 }
 0x2a5   : > { %v1169_v44 = vsel %vm1157_vm3, %v1167_v31, -3.4028235e+38 }
 0x2a6   : > { %v1171_v17 = vsel %vm1170_vm4, %v1169_v44, -inf }
 0x2a7   : > { %1172 = vmax.xlane.f32.xlu2 %v1171_v17 }
 0x31a   : > { %v1173_v38 = vpop.xlane.xlu2 %1172 }
 0x31b   : > { %v1175_v22 = vperm.slane %v1173_v38, 0  ;;  %v1176_v59 = vperm.slane %v1173_v38, 1  ;;  %v1177_v26 = vperm.slane %v1173_v38, 2  ;;  %v1178_v24 = vperm.slane %v1173_v38, 3 }
 0x31d   : > { %1184 = vst.msk [vmem:[%s352_s18] sm:$0x1] %vm1183_vm5, %v1175_v22 }
 0x31e   : > { %1185 = vst.msk [vmem:[%s352_s18 + $0x1] sm:$0x1] %vm1183_vm5, %v1176_v59 }
 0x31f   : > { %1186 = vst.msk [vmem:[%s352_s18 + $0x2] sm:$0x1] %vm1183_vm5, %v1177_v26 }
 0x320   : > { %1187 = vst.msk [vmem:[%s352_s18 + $0x3] sm:$0x1] %vm1183_vm5, %v1178_v24 }
 0x321 PF: > { %s2813_s29 = smov %s1783_s26  ;;  %p21_p4 = scmp.ge.s32.totalorder %s1783_s26, 4  }
 0x322   : > { %s2814_s26 = smov %s1664_s27  ;;  %s2815_s27 = smov %s1668_s28 }
 0x323   : > { %s2816_s28 = smov %s1792_s13  ;;  %23 = sbr.rel (!%p21_p4) target bundleno = 8 (0x8), region = 108 }
 0x328   :  { %1208 = vsyncpa [#allocation4], 1 }
 0x329   :  { %1210 = vsyncpa [#allocation4 + $0x1], 1 }
 0x32a   :  { %1211 = vsyncpa [#allocation5], 1 }
 0x32b   :  { %1213 = vsyncpa [#allocation5 + $0x1], 1 }
 0x32c   :  { %1214 = vsyncpa [#allocation8], 1 }
 0x32d   :  { %1215 = vsyncpa [#allocation11], 1 }

</bundles_post_ra>
